<compile_context>
chip_gen: v7x
topology: tpu7x:2x2x1
jax: 0.10.0
libtpu: 0.0.40
codegen_flags: <defaults>
</compile_context>

<pallas_src>
import numpy as np
import jax
import jax.numpy as jnp
from jax.experimental import pallas as pl
from jax.experimental.pallas import tpu as pltpu


def _round_up(x, m):
    return (x + m - 1) // m * m


def _lstm_recurrence_kernel(len_ref, xpre_ref, whh_ref, wout_ref, bout_ref,
                            logits_ref):
    """Single-invocation kernel; whole sequence resident in VMEM.

    len_ref   : (B, 1)    int32  sequence lengths
    xpre_ref  : (T, B, G) f32    x @ W_ih + b_ih + b_hh, G = 4*Hp (i,f,g,o)
    whh_ref   : (Hp, G)   f32    fused recurrent weight
    wout_ref  : (Hp, Op)  f32    padded linear-head weight
    bout_ref  : (1, Op)   f32    padded linear-head bias
    logits_ref: (B, Op)   f32
    """
    T, B, G = xpre_ref.shape
    Hp = G // 4

    last_t = len_ref[...] - 1          # (B, 1), loop-invariant
    whh = whh_ref[...]                 # (Hp, G), loop-invariant

    def step(t, carry):
        h, c, rep = carry
        # One fused (B, Hp) x (Hp, 4*Hp) MXU matmul per timestep.
        gates = xpre_ref[t] + jnp.dot(h, whh,
                                      preferred_element_type=jnp.float32)
        i_g = jax.nn.sigmoid(gates[:, 0 * Hp:1 * Hp])
        f_g = jax.nn.sigmoid(gates[:, 1 * Hp:2 * Hp])
        g_g = jnp.tanh(gates[:, 2 * Hp:3 * Hp])
        o_g = jax.nn.sigmoid(gates[:, 3 * Hp:4 * Hp])
        c = f_g * c + i_g * g_g
        h = o_g * jnp.tanh(c)
        # Emulates pack_padded_sequence + gather(lengths-1): freeze the hidden
        # state of row b at its last valid timestep.
        rep = jnp.where(last_t == t, h, rep)
        return h, c, rep

    zeros = jnp.zeros((B, Hp), jnp.float32)
    _, _, rep = jax.lax.fori_loop(0, T, step, (zeros, zeros, zeros),
                                  unroll=True if T <= 64 else 4)

    logits_ref[...] = (jnp.dot(rep, wout_ref[...],
                               preferred_element_type=jnp.float32)
                       + bout_ref[...])


def lstm_forward(x, lengths, emb_table, w_ih, w_hh, b_ih, b_hh, w_out, b_out,
                 output_size):
    """Forward pass matching the PyTorch module.

    Parameter shapes follow torch.nn.LSTM / nn.Linear:
      emb_table: (V, D)
      w_ih: (4H, D), w_hh: (4H, H), b_ih/b_hh: (4H,)   gate order i, f, g, o
      w_out: (O, H), b_out: (O,)
    """
    B, T = x.shape
    D = emb_table.shape[1]
    H = w_hh.shape[1]
    O = w_out.shape[0]
    Hp = _round_up(H, 128)     # 100 -> 128  (lane-dense hidden)
    G = 4 * Hp                 # 512 fused gate width
    Op = _round_up(O, 128)     # lane-dense final store; sliced back below
    f32 = jnp.float32

    # ---- Fused, lane-padded parameters (column block k holds gate k) ----
    w_ih_f = jnp.zeros((D, G), f32)
    w_hh_f = jnp.zeros((Hp, G), f32)
    b_f = jnp.zeros((1, G), f32)
    for k in range(4):
        w_ih_f = w_ih_f.at[:, k * Hp:k * Hp + H].set(
            w_ih[k * H:(k + 1) * H, :].T.astype(f32))
        w_hh_f = w_hh_f.at[:H, k * Hp:k * Hp + H].set(
            w_hh[k * H:(k + 1) * H, :].T.astype(f32))
        b_f = b_f.at[:, k * Hp:k * Hp + H].set(
            (b_ih[k * H:(k + 1) * H] + b_hh[k * H:(k + 1) * H]).astype(f32))

    w_out_p = jnp.zeros((Hp, Op), f32).at[:H, :O].set(w_out.T.astype(f32))
    b_out_p = jnp.zeros((1, Op), f32).at[:, :O].set(b_out.astype(f32))

    # ---- Embedding lookup + input projection, hoisted out of the
    # recurrence: one large (B*T, D) x (D, 4Hp) matmul, emitted time-major so
    # the kernel reads x_pre[t] with a cheap leading-dim dynamic index. ----
    emb = jnp.take(emb_table.astype(f32), x, axis=0)              # (B, T, D)
    x_pre = jnp.einsum('btd,dg->tbg', emb, w_ih_f,
                       precision=jax.lax.Precision.HIGHEST) + b_f  # (T, B, G)

    lengths2d = jnp.clip(lengths.astype(jnp.int32), 1, T).reshape(B, 1)

    vmem = pl.BlockSpec(memory_space=pltpu.MemorySpace.VMEM)
    logits_p = pl.pallas_call(
        _lstm_recurrence_kernel,
        out_shape=jax.ShapeDtypeStruct((B, Op), f32),
        in_specs=[vmem, vmem, vmem, vmem, vmem],
        out_specs=vmem,
    )(lengths2d, x_pre, w_hh_f, w_out_p, b_out_p)

    logits = logits_p[:, :O]
    if output_size == 1:
        logits = logits[:, 0]                    # torch .squeeze(1)
    return logits


def lstm_reference(x, lengths, emb_table, w_ih, w_hh, b_ih, b_hh, w_out, b_out,
                   output_size):
    """Pure-JAX reference matching the PyTorch forward."""
    B, T = x.shape
    H = w_hh.shape[1]
    hi = jax.lax.Precision.HIGHEST
    emb = jnp.take(emb_table, x, axis=0)          # (B, T, D)
    emb_t = jnp.transpose(emb, (1, 0, 2))         # (T, B, D)

    def step(carry, x_t):
        h, c = carry
        pre = (jnp.dot(x_t, w_ih.T, precision=hi)
               + jnp.dot(h, w_hh.T, precision=hi) + b_ih + b_hh)   # (B, 4H)
        i = jax.nn.sigmoid(pre[:, 0 * H:1 * H])
        f = jax.nn.sigmoid(pre[:, 1 * H:2 * H])
        g = jnp.tanh(pre[:, 2 * H:3 * H])
        o = jax.nn.sigmoid(pre[:, 3 * H:4 * H])
        c = f * c + i * g
        h = o * jnp.tanh(c)
        return (h, c), h

    init = (jnp.zeros((B, H), jnp.float32), jnp.zeros((B, H), jnp.float32))
    _, hs = jax.lax.scan(step, init, emb_t)       # hs: (T, B, H)
    rep = hs[lengths - 1, jnp.arange(B)]          # (B, H)
    logits = jnp.dot(rep, w_out.T, precision=hi) + b_out
    if output_size == 1:
        logits = logits[:, 0]
    return logits


if __name__ == "__main__":
    # Small, deterministic synthetic problem (module fixes hidden_size=100,
    # num_layers=1, bidirectional=False).
    num_embeddings, emb_dim = 50, 64
    hidden = 100
    output_size = 3
    B, T = 8, 8

    key = jax.random.PRNGKey(0)
    ks = jax.random.split(key, 9)
    s = float(1.0 / np.sqrt(hidden))

    emb_table = jax.random.normal(ks[0], (num_embeddings, emb_dim), jnp.float32)
    w_ih = jax.random.uniform(ks[1], (4 * hidden, emb_dim), jnp.float32, -s, s)
    w_hh = jax.random.uniform(ks[2], (4 * hidden, hidden), jnp.float32, -s, s)
    b_ih = jax.random.uniform(ks[3], (4 * hidden,), jnp.float32, -s, s)
    b_hh = jax.random.uniform(ks[4], (4 * hidden,), jnp.float32, -s, s)
    w_out = jax.random.uniform(ks[5], (output_size, hidden), jnp.float32, -s, s)
    b_out = jax.random.uniform(ks[6], (output_size,), jnp.float32, -s, s)

    x = jax.random.randint(ks[7], (B, T), 0, num_embeddings, jnp.int32)
    lengths = jax.random.randint(ks[8], (B,), 1, T + 1, jnp.int32)

    logits = lstm_forward(x, lengths, emb_table, w_ih, w_hh, b_ih, b_hh,
                          w_out, b_out, output_size)
    logits = jax.block_until_ready(logits)

    ref = lstm_reference(x, lengths, emb_table, w_ih, w_hh, b_ih, b_hh,
                         w_out, b_out, output_size)
    np.testing.assert_allclose(np.asarray(logits), np.asarray(ref),
                               rtol=1e-3, atol=1e-3)
    print("KERNEL_OK")
</pallas_src>

<mosaic_0001>
module attributes {stable_mosaic.version = 11 : i64} {
  func.func @_lstm_recurrence_kernel(%arg0: memref<8x1xi32, #tpu.memory_space<vmem>>, %arg1: memref<8x8x512xf32, #tpu.memory_space<vmem>>, %arg2: memref<128x512xf32, #tpu.memory_space<vmem>>, %arg3: memref<128x128xf32, #tpu.memory_space<vmem>>, %arg4: memref<1x128xf32, #tpu.memory_space<vmem>>, %arg5: memref<8x128xf32, #tpu.memory_space<vmem>>) attributes {dimension_semantics = [], scalar_prefetch = 0 : i64, scratch_operands = 0 : i64, tpu.core_type = #tpu.core_type<tc>} {
    %c0 = arith.constant 0 : index
    %c0_0 = arith.constant 0 : index
    %0 = vector.load %arg0[%c0, %c0_0] : memref<8x1xi32, #tpu.memory_space<vmem>>, vector<8x1xi32>
    %c1_i32 = arith.constant 1 : i32
    %1 = vector.broadcast %c1_i32 : i32 to vector<8x1xi32>
    %2 = arith.subi %0, %1 : vector<8x1xi32>
    %c0_1 = arith.constant 0 : index
    %c0_2 = arith.constant 0 : index
    %3 = vector.load %arg2[%c0_1, %c0_2] : memref<128x512xf32, #tpu.memory_space<vmem>>, vector<128x512xf32>
    %cst = arith.constant 0.000000e+00 : f32
    %4 = vector.broadcast %cst : f32 to vector<8x128xf32>
    %c0_i32 = arith.constant 0 : i32
    %5 = arith.index_cast %c0_i32 : i32 to index
    %c0_3 = arith.constant 0 : index
    %c0_4 = arith.constant 0 : index
    %6 = vector.load %arg1[%5, %c0_3, %c0_4] : memref<8x8x512xf32, #tpu.memory_space<vmem>>, vector<1x8x512xf32>
    %7 = vector.shape_cast %6 : vector<1x8x512xf32> to vector<8x512xf32>
    %cst_5 = arith.constant dense<0.000000e+00> : vector<8x512xf32>
    %8 = tpu.matmul %4, %3, %cst_5 {dimension_numbers = #tpu.dot_dimension_numbers<[1], [0], [0], [1], [0, 0, 1, 1], [], []>} : vector<8x128xf32>, vector<128x512xf32>, vector<8x512xf32> -> vector<8x512xf32>
    %9 = arith.addf %7, %8 : vector<8x512xf32>
    %10 = vector.extract_strided_slice %9 {offsets = [0, 0], sizes = [8, 128], strides = [1, 1]} : vector<8x512xf32> to vector<8x128xf32>
    %11 = arith.negf %10 : vector<8x128xf32>
    %12 = math.exp %11 : vector<8x128xf32>
    %cst_6 = arith.constant 1.000000e+00 : f32
    %13 = vector.broadcast %cst_6 : f32 to vector<8x128xf32>
    %14 = arith.addf %13, %12 : vector<8x128xf32>
    %15 = arith.divf %13, %14 : vector<8x128xf32>
    %16 = vector.extract_strided_slice %9 {offsets = [0, 128], sizes = [8, 128], strides = [1, 1]} : vector<8x512xf32> to vector<8x128xf32>
    %17 = arith.negf %16 : vector<8x128xf32>
    %18 = math.exp %17 : vector<8x128xf32>
    %cst_7 = arith.constant 1.000000e+00 : f32
    %19 = vector.broadcast %cst_7 : f32 to vector<8x128xf32>
    %20 = arith.addf %19, %18 : vector<8x128xf32>
    %21 = arith.divf %19, %20 : vector<8x128xf32>
    %22 = vector.extract_strided_slice %9 {offsets = [0, 256], sizes = [8, 128], strides = [1, 1]} : vector<8x512xf32> to vector<8x128xf32>
    %23 = math.tanh %22 : vector<8x128xf32>
    %24 = vector.extract_strided_slice %9 {offsets = [0, 384], sizes = [8, 128], strides = [1, 1]} : vector<8x512xf32> to vector<8x128xf32>
    %25 = arith.negf %24 : vector<8x128xf32>
    %26 = math.exp %25 : vector<8x128xf32>
    %cst_8 = arith.constant 1.000000e+00 : f32
    %27 = vector.broadcast %cst_8 : f32 to vector<8x128xf32>
    %28 = arith.addf %27, %26 : vector<8x128xf32>
    %29 = arith.divf %27, %28 : vector<8x128xf32>
    %30 = arith.mulf %21, %4 : vector<8x128xf32>
    %31 = arith.mulf %15, %23 : vector<8x128xf32>
    %32 = arith.addf %30, %31 : vector<8x128xf32>
    %33 = math.tanh %32 : vector<8x128xf32>
    %34 = arith.mulf %29, %33 : vector<8x128xf32>
    %35 = vector.broadcast %c0_i32 : i32 to vector<8x1xi32>
    %36 = arith.cmpi eq, %2, %35 : vector<8x1xi32>
    %37 = vector.shape_cast %36 : vector<8x1xi1> to vector<8x1xi1>
    %38 = vector.broadcast %37 : vector<8x1xi1> to vector<8x128xi1>
    %39 = arith.select %38, %34, %4 : vector<8x128xi1>, vector<8x128xf32>
    %c1_i32_9 = arith.constant 1 : i32
    %40 = arith.index_cast %c1_i32_9 : i32 to index
    %c0_10 = arith.constant 0 : index
    %c0_11 = arith.constant 0 : index
    %41 = vector.load %arg1[%40, %c0_10, %c0_11] : memref<8x8x512xf32, #tpu.memory_space<vmem>>, vector<1x8x512xf32>
    %42 = vector.shape_cast %41 : vector<1x8x512xf32> to vector<8x512xf32>
    %cst_12 = arith.constant dense<0.000000e+00> : vector<8x512xf32>
    %43 = tpu.matmul %34, %3, %cst_12 {dimension_numbers = #tpu.dot_dimension_numbers<[1], [0], [0], [1], [0, 0, 1, 1], [], []>} : vector<8x128xf32>, vector<128x512xf32>, vector<8x512xf32> -> vector<8x512xf32>
    %44 = arith.addf %42, %43 : vector<8x512xf32>
    %45 = vector.extract_strided_slice %44 {offsets = [0, 0], sizes = [8, 128], strides = [1, 1]} : vector<8x512xf32> to vector<8x128xf32>
    %46 = arith.negf %45 : vector<8x128xf32>
    %47 = math.exp %46 : vector<8x128xf32>
    %cst_13 = arith.constant 1.000000e+00 : f32
    %48 = vector.broadcast %cst_13 : f32 to vector<8x128xf32>
    %49 = arith.addf %48, %47 : vector<8x128xf32>
    %50 = arith.divf %48, %49 : vector<8x128xf32>
    %51 = vector.extract_strided_slice %44 {offsets = [0, 128], sizes = [8, 128], strides = [1, 1]} : vector<8x512xf32> to vector<8x128xf32>
    %52 = arith.negf %51 : vector<8x128xf32>
    %53 = math.exp %52 : vector<8x128xf32>
    %cst_14 = arith.constant 1.000000e+00 : f32
    %54 = vector.broadcast %cst_14 : f32 to vector<8x128xf32>
    %55 = arith.addf %54, %53 : vector<8x128xf32>
    %56 = arith.divf %54, %55 : vector<8x128xf32>
    %57 = vector.extract_strided_slice %44 {offsets = [0, 256], sizes = [8, 128], strides = [1, 1]} : vector<8x512xf32> to vector<8x128xf32>
    %58 = math.tanh %57 : vector<8x128xf32>
    %59 = vector.extract_strided_slice %44 {offsets = [0, 384], sizes = [8, 128], strides = [1, 1]} : vector<8x512xf32> to vector<8x128xf32>
    %60 = arith.negf %59 : vector<8x128xf32>
    %61 = math.exp %60 : vector<8x128xf32>
    %cst_15 = arith.constant 1.000000e+00 : f32
    %62 = vector.broadcast %cst_15 : f32 to vector<8x128xf32>
    %63 = arith.addf %62, %61 : vector<8x128xf32>
    %64 = arith.divf %62, %63 : vector<8x128xf32>
    %65 = arith.mulf %56, %32 : vector<8x128xf32>
    %66 = arith.mulf %50, %58 : vector<8x128xf32>
    %67 = arith.addf %65, %66 : vector<8x128xf32>
    %68 = math.tanh %67 : vector<8x128xf32>
    %69 = arith.mulf %64, %68 : vector<8x128xf32>
    %70 = vector.broadcast %c1_i32_9 : i32 to vector<8x1xi32>
    %71 = arith.cmpi eq, %2, %70 : vector<8x1xi32>
    %72 = vector.shape_cast %71 : vector<8x1xi1> to vector<8x1xi1>
    %73 = vector.broadcast %72 : vector<8x1xi1> to vector<8x128xi1>
    %74 = arith.select %73, %69, %39 : vector<8x128xi1>, vector<8x128xf32>
    %c2_i32 = arith.constant 2 : i32
    %75 = arith.index_cast %c2_i32 : i32 to index
    %c0_16 = arith.constant 0 : index
    %c0_17 = arith.constant 0 : index
    %76 = vector.load %arg1[%75, %c0_16, %c0_17] : memref<8x8x512xf32, #tpu.memory_space<vmem>>, vector<1x8x512xf32>
    %77 = vector.shape_cast %76 : vector<1x8x512xf32> to vector<8x512xf32>
    %cst_18 = arith.constant dense<0.000000e+00> : vector<8x512xf32>
    %78 = tpu.matmul %69, %3, %cst_18 {dimension_numbers = #tpu.dot_dimension_numbers<[1], [0], [0], [1], [0, 0, 1, 1], [], []>} : vector<8x128xf32>, vector<128x512xf32>, vector<8x512xf32> -> vector<8x512xf32>
    %79 = arith.addf %77, %78 : vector<8x512xf32>
    %80 = vector.extract_strided_slice %79 {offsets = [0, 0], sizes = [8, 128], strides = [1, 1]} : vector<8x512xf32> to vector<8x128xf32>
    %81 = arith.negf %80 : vector<8x128xf32>
    %82 = math.exp %81 : vector<8x128xf32>
    %cst_19 = arith.constant 1.000000e+00 : f32
    %83 = vector.broadcast %cst_19 : f32 to vector<8x128xf32>
    %84 = arith.addf %83, %82 : vector<8x128xf32>
    %85 = arith.divf %83, %84 : vector<8x128xf32>
    %86 = vector.extract_strided_slice %79 {offsets = [0, 128], sizes = [8, 128], strides = [1, 1]} : vector<8x512xf32> to vector<8x128xf32>
    %87 = arith.negf %86 : vector<8x128xf32>
    %88 = math.exp %87 : vector<8x128xf32>
    %cst_20 = arith.constant 1.000000e+00 : f32
    %89 = vector.broadcast %cst_20 : f32 to vector<8x128xf32>
    %90 = arith.addf %89, %88 : vector<8x128xf32>
    %91 = arith.divf %89, %90 : vector<8x128xf32>
    %92 = vector.extract_strided_slice %79 {offsets = [0, 256], sizes = [8, 128], strides = [1, 1]} : vector<8x512xf32> to vector<8x128xf32>
    %93 = math.tanh %92 : vector<8x128xf32>
    %94 = vector.extract_strided_slice %79 {offsets = [0, 384], sizes = [8, 128], strides = [1, 1]} : vector<8x512xf32> to vector<8x128xf32>
    %95 = arith.negf %94 : vector<8x128xf32>
    %96 = math.exp %95 : vector<8x128xf32>
    %cst_21 = arith.constant 1.000000e+00 : f32
    %97 = vector.broadcast %cst_21 : f32 to vector<8x128xf32>
    %98 = arith.addf %97, %96 : vector<8x128xf32>
    %99 = arith.divf %97, %98 : vector<8x128xf32>
    %100 = arith.mulf %91, %67 : vector<8x128xf32>
    %101 = arith.mulf %85, %93 : vector<8x128xf32>
    %102 = arith.addf %100, %101 : vector<8x128xf32>
    %103 = math.tanh %102 : vector<8x128xf32>
    %104 = arith.mulf %99, %103 : vector<8x128xf32>
    %105 = vector.broadcast %c2_i32 : i32 to vector<8x1xi32>
    %106 = arith.cmpi eq, %2, %105 : vector<8x1xi32>
    %107 = vector.shape_cast %106 : vector<8x1xi1> to vector<8x1xi1>
    %108 = vector.broadcast %107 : vector<8x1xi1> to vector<8x128xi1>
    %109 = arith.select %108, %104, %74 : vector<8x128xi1>, vector<8x128xf32>
    %c3_i32 = arith.constant 3 : i32
    %110 = arith.index_cast %c3_i32 : i32 to index
    %c0_22 = arith.constant 0 : index
    %c0_23 = arith.constant 0 : index
    %111 = vector.load %arg1[%110, %c0_22, %c0_23] : memref<8x8x512xf32, #tpu.memory_space<vmem>>, vector<1x8x512xf32>
    %112 = vector.shape_cast %111 : vector<1x8x512xf32> to vector<8x512xf32>
    %cst_24 = arith.constant dense<0.000000e+00> : vector<8x512xf32>
    %113 = tpu.matmul %104, %3, %cst_24 {dimension_numbers = #tpu.dot_dimension_numbers<[1], [0], [0], [1], [0, 0, 1, 1], [], []>} : vector<8x128xf32>, vector<128x512xf32>, vector<8x512xf32> -> vector<8x512xf32>
    %114 = arith.addf %112, %113 : vector<8x512xf32>
    %115 = vector.extract_strided_slice %114 {offsets = [0, 0], sizes = [8, 128], strides = [1, 1]} : vector<8x512xf32> to vector<8x128xf32>
    %116 = arith.negf %115 : vector<8x128xf32>
    %117 = math.exp %116 : vector<8x128xf32>
    %cst_25 = arith.constant 1.000000e+00 : f32
    %118 = vector.broadcast %cst_25 : f32 to vector<8x128xf32>
    %119 = arith.addf %118, %117 : vector<8x128xf32>
    %120 = arith.divf %118, %119 : vector<8x128xf32>
    %121 = vector.extract_strided_slice %114 {offsets = [0, 128], sizes = [8, 128], strides = [1, 1]} : vector<8x512xf32> to vector<8x128xf32>
    %122 = arith.negf %121 : vector<8x128xf32>
    %123 = math.exp %122 : vector<8x128xf32>
    %cst_26 = arith.constant 1.000000e+00 : f32
    %124 = vector.broadcast %cst_26 : f32 to vector<8x128xf32>
    %125 = arith.addf %124, %123 : vector<8x128xf32>
    %126 = arith.divf %124, %125 : vector<8x128xf32>
    %127 = vector.extract_strided_slice %114 {offsets = [0, 256], sizes = [8, 128], strides = [1, 1]} : vector<8x512xf32> to vector<8x128xf32>
    %128 = math.tanh %127 : vector<8x128xf32>
    %129 = vector.extract_strided_slice %114 {offsets = [0, 384], sizes = [8, 128], strides = [1, 1]} : vector<8x512xf32> to vector<8x128xf32>
    %130 = arith.negf %129 : vector<8x128xf32>
    %131 = math.exp %130 : vector<8x128xf32>
    %cst_27 = arith.constant 1.000000e+00 : f32
    %132 = vector.broadcast %cst_27 : f32 to vector<8x128xf32>
    %133 = arith.addf %132, %131 : vector<8x128xf32>
    %134 = arith.divf %132, %133 : vector<8x128xf32>
    %135 = arith.mulf %126, %102 : vector<8x128xf32>
    %136 = arith.mulf %120, %128 : vector<8x128xf32>
    %137 = arith.addf %135, %136 : vector<8x128xf32>
    %138 = math.tanh %137 : vector<8x128xf32>
    %139 = arith.mulf %134, %138 : vector<8x128xf32>
    %140 = vector.broadcast %c3_i32 : i32 to vector<8x1xi32>
    %141 = arith.cmpi eq, %2, %140 : vector<8x1xi32>
    %142 = vector.shape_cast %141 : vector<8x1xi1> to vector<8x1xi1>
    %143 = vector.broadcast %142 : vector<8x1xi1> to vector<8x128xi1>
    %144 = arith.select %143, %139, %109 : vector<8x128xi1>, vector<8x128xf32>
    %c4_i32 = arith.constant 4 : i32
    %145 = arith.index_cast %c4_i32 : i32 to index
    %c0_28 = arith.constant 0 : index
    %c0_29 = arith.constant 0 : index
    %146 = vector.load %arg1[%145, %c0_28, %c0_29] : memref<8x8x512xf32, #tpu.memory_space<vmem>>, vector<1x8x512xf32>
    %147 = vector.shape_cast %146 : vector<1x8x512xf32> to vector<8x512xf32>
    %cst_30 = arith.constant dense<0.000000e+00> : vector<8x512xf32>
    %148 = tpu.matmul %139, %3, %cst_30 {dimension_numbers = #tpu.dot_dimension_numbers<[1], [0], [0], [1], [0, 0, 1, 1], [], []>} : vector<8x128xf32>, vector<128x512xf32>, vector<8x512xf32> -> vector<8x512xf32>
    %149 = arith.addf %147, %148 : vector<8x512xf32>
    %150 = vector.extract_strided_slice %149 {offsets = [0, 0], sizes = [8, 128], strides = [1, 1]} : vector<8x512xf32> to vector<8x128xf32>
    %151 = arith.negf %150 : vector<8x128xf32>
    %152 = math.exp %151 : vector<8x128xf32>
    %cst_31 = arith.constant 1.000000e+00 : f32
    %153 = vector.broadcast %cst_31 : f32 to vector<8x128xf32>
    %154 = arith.addf %153, %152 : vector<8x128xf32>
    %155 = arith.divf %153, %154 : vector<8x128xf32>
    %156 = vector.extract_strided_slice %149 {offsets = [0, 128], sizes = [8, 128], strides = [1, 1]} : vector<8x512xf32> to vector<8x128xf32>
    %157 = arith.negf %156 : vector<8x128xf32>
    %158 = math.exp %157 : vector<8x128xf32>
    %cst_32 = arith.constant 1.000000e+00 : f32
    %159 = vector.broadcast %cst_32 : f32 to vector<8x128xf32>
    %160 = arith.addf %159, %158 : vector<8x128xf32>
    %161 = arith.divf %159, %160 : vector<8x128xf32>
    %162 = vector.extract_strided_slice %149 {offsets = [0, 256], sizes = [8, 128], strides = [1, 1]} : vector<8x512xf32> to vector<8x128xf32>
    %163 = math.tanh %162 : vector<8x128xf32>
    %164 = vector.extract_strided_slice %149 {offsets = [0, 384], sizes = [8, 128], strides = [1, 1]} : vector<8x512xf32> to vector<8x128xf32>
    %165 = arith.negf %164 : vector<8x128xf32>
    %166 = math.exp %165 : vector<8x128xf32>
    %cst_33 = arith.constant 1.000000e+00 : f32
    %167 = vector.broadcast %cst_33 : f32 to vector<8x128xf32>
    %168 = arith.addf %167, %166 : vector<8x128xf32>
    %169 = arith.divf %167, %168 : vector<8x128xf32>
    %170 = arith.mulf %161, %137 : vector<8x128xf32>
    %171 = arith.mulf %155, %163 : vector<8x128xf32>
    %172 = arith.addf %170, %171 : vector<8x128xf32>
    %173 = math.tanh %172 : vector<8x128xf32>
    %174 = arith.mulf %169, %173 : vector<8x128xf32>
    %175 = vector.broadcast %c4_i32 : i32 to vector<8x1xi32>
    %176 = arith.cmpi eq, %2, %175 : vector<8x1xi32>
    %177 = vector.shape_cast %176 : vector<8x1xi1> to vector<8x1xi1>
    %178 = vector.broadcast %177 : vector<8x1xi1> to vector<8x128xi1>
    %179 = arith.select %178, %174, %144 : vector<8x128xi1>, vector<8x128xf32>
    %c5_i32 = arith.constant 5 : i32
    %180 = arith.index_cast %c5_i32 : i32 to index
    %c0_34 = arith.constant 0 : index
    %c0_35 = arith.constant 0 : index
    %181 = vector.load %arg1[%180, %c0_34, %c0_35] : memref<8x8x512xf32, #tpu.memory_space<vmem>>, vector<1x8x512xf32>
    %182 = vector.shape_cast %181 : vector<1x8x512xf32> to vector<8x512xf32>
    %cst_36 = arith.constant dense<0.000000e+00> : vector<8x512xf32>
    %183 = tpu.matmul %174, %3, %cst_36 {dimension_numbers = #tpu.dot_dimension_numbers<[1], [0], [0], [1], [0, 0, 1, 1], [], []>} : vector<8x128xf32>, vector<128x512xf32>, vector<8x512xf32> -> vector<8x512xf32>
    %184 = arith.addf %182, %183 : vector<8x512xf32>
    %185 = vector.extract_strided_slice %184 {offsets = [0, 0], sizes = [8, 128], strides = [1, 1]} : vector<8x512xf32> to vector<8x128xf32>
    %186 = arith.negf %185 : vector<8x128xf32>
    %187 = math.exp %186 : vector<8x128xf32>
    %cst_37 = arith.constant 1.000000e+00 : f32
    %188 = vector.broadcast %cst_37 : f32 to vector<8x128xf32>
    %189 = arith.addf %188, %187 : vector<8x128xf32>
    %190 = arith.divf %188, %189 : vector<8x128xf32>
    %191 = vector.extract_strided_slice %184 {offsets = [0, 128], sizes = [8, 128], strides = [1, 1]} : vector<8x512xf32> to vector<8x128xf32>
    %192 = arith.negf %191 : vector<8x128xf32>
    %193 = math.exp %192 : vector<8x128xf32>
    %cst_38 = arith.constant 1.000000e+00 : f32
    %194 = vector.broadcast %cst_38 : f32 to vector<8x128xf32>
    %195 = arith.addf %194, %193 : vector<8x128xf32>
    %196 = arith.divf %194, %195 : vector<8x128xf32>
    %197 = vector.extract_strided_slice %184 {offsets = [0, 256], sizes = [8, 128], strides = [1, 1]} : vector<8x512xf32> to vector<8x128xf32>
    %198 = math.tanh %197 : vector<8x128xf32>
    %199 = vector.extract_strided_slice %184 {offsets = [0, 384], sizes = [8, 128], strides = [1, 1]} : vector<8x512xf32> to vector<8x128xf32>
    %200 = arith.negf %199 : vector<8x128xf32>
    %201 = math.exp %200 : vector<8x128xf32>
    %cst_39 = arith.constant 1.000000e+00 : f32
    %202 = vector.broadcast %cst_39 : f32 to vector<8x128xf32>
    %203 = arith.addf %202, %201 : vector<8x128xf32>
    %204 = arith.divf %202, %203 : vector<8x128xf32>
    %205 = arith.mulf %196, %172 : vector<8x128xf32>
    %206 = arith.mulf %190, %198 : vector<8x128xf32>
    %207 = arith.addf %205, %206 : vector<8x128xf32>
    %208 = math.tanh %207 : vector<8x128xf32>
    %209 = arith.mulf %204, %208 : vector<8x128xf32>
    %210 = vector.broadcast %c5_i32 : i32 to vector<8x1xi32>
    %211 = arith.cmpi eq, %2, %210 : vector<8x1xi32>
    %212 = vector.shape_cast %211 : vector<8x1xi1> to vector<8x1xi1>
    %213 = vector.broadcast %212 : vector<8x1xi1> to vector<8x128xi1>
    %214 = arith.select %213, %209, %179 : vector<8x128xi1>, vector<8x128xf32>
    %c6_i32 = arith.constant 6 : i32
    %215 = arith.index_cast %c6_i32 : i32 to index
    %c0_40 = arith.constant 0 : index
    %c0_41 = arith.constant 0 : index
    %216 = vector.load %arg1[%215, %c0_40, %c0_41] : memref<8x8x512xf32, #tpu.memory_space<vmem>>, vector<1x8x512xf32>
    %217 = vector.shape_cast %216 : vector<1x8x512xf32> to vector<8x512xf32>
    %cst_42 = arith.constant dense<0.000000e+00> : vector<8x512xf32>
    %218 = tpu.matmul %209, %3, %cst_42 {dimension_numbers = #tpu.dot_dimension_numbers<[1], [0], [0], [1], [0, 0, 1, 1], [], []>} : vector<8x128xf32>, vector<128x512xf32>, vector<8x512xf32> -> vector<8x512xf32>
    %219 = arith.addf %217, %218 : vector<8x512xf32>
    %220 = vector.extract_strided_slice %219 {offsets = [0, 0], sizes = [8, 128], strides = [1, 1]} : vector<8x512xf32> to vector<8x128xf32>
    %221 = arith.negf %220 : vector<8x128xf32>
    %222 = math.exp %221 : vector<8x128xf32>
    %cst_43 = arith.constant 1.000000e+00 : f32
    %223 = vector.broadcast %cst_43 : f32 to vector<8x128xf32>
    %224 = arith.addf %223, %222 : vector<8x128xf32>
    %225 = arith.divf %223, %224 : vector<8x128xf32>
    %226 = vector.extract_strided_slice %219 {offsets = [0, 128], sizes = [8, 128], strides = [1, 1]} : vector<8x512xf32> to vector<8x128xf32>
    %227 = arith.negf %226 : vector<8x128xf32>
    %228 = math.exp %227 : vector<8x128xf32>
    %cst_44 = arith.constant 1.000000e+00 : f32
    %229 = vector.broadcast %cst_44 : f32 to vector<8x128xf32>
    %230 = arith.addf %229, %228 : vector<8x128xf32>
    %231 = arith.divf %229, %230 : vector<8x128xf32>
    %232 = vector.extract_strided_slice %219 {offsets = [0, 256], sizes = [8, 128], strides = [1, 1]} : vector<8x512xf32> to vector<8x128xf32>
    %233 = math.tanh %232 : vector<8x128xf32>
    %234 = vector.extract_strided_slice %219 {offsets = [0, 384], sizes = [8, 128], strides = [1, 1]} : vector<8x512xf32> to vector<8x128xf32>
    %235 = arith.negf %234 : vector<8x128xf32>
    %236 = math.exp %235 : vector<8x128xf32>
    %cst_45 = arith.constant 1.000000e+00 : f32
    %237 = vector.broadcast %cst_45 : f32 to vector<8x128xf32>
    %238 = arith.addf %237, %236 : vector<8x128xf32>
    %239 = arith.divf %237, %238 : vector<8x128xf32>
    %240 = arith.mulf %231, %207 : vector<8x128xf32>
    %241 = arith.mulf %225, %233 : vector<8x128xf32>
    %242 = arith.addf %240, %241 : vector<8x128xf32>
    %243 = math.tanh %242 : vector<8x128xf32>
    %244 = arith.mulf %239, %243 : vector<8x128xf32>
    %245 = vector.broadcast %c6_i32 : i32 to vector<8x1xi32>
    %246 = arith.cmpi eq, %2, %245 : vector<8x1xi32>
    %247 = vector.shape_cast %246 : vector<8x1xi1> to vector<8x1xi1>
    %248 = vector.broadcast %247 : vector<8x1xi1> to vector<8x128xi1>
    %249 = arith.select %248, %244, %214 : vector<8x128xi1>, vector<8x128xf32>
    %c7_i32 = arith.constant 7 : i32
    %250 = arith.index_cast %c7_i32 : i32 to index
    %c0_46 = arith.constant 0 : index
    %c0_47 = arith.constant 0 : index
    %251 = vector.load %arg1[%250, %c0_46, %c0_47] : memref<8x8x512xf32, #tpu.memory_space<vmem>>, vector<1x8x512xf32>
    %252 = vector.shape_cast %251 : vector<1x8x512xf32> to vector<8x512xf32>
    %cst_48 = arith.constant dense<0.000000e+00> : vector<8x512xf32>
    %253 = tpu.matmul %244, %3, %cst_48 {dimension_numbers = #tpu.dot_dimension_numbers<[1], [0], [0], [1], [0, 0, 1, 1], [], []>} : vector<8x128xf32>, vector<128x512xf32>, vector<8x512xf32> -> vector<8x512xf32>
    %254 = arith.addf %252, %253 : vector<8x512xf32>
    %255 = vector.extract_strided_slice %254 {offsets = [0, 0], sizes = [8, 128], strides = [1, 1]} : vector<8x512xf32> to vector<8x128xf32>
    %256 = arith.negf %255 : vector<8x128xf32>
    %257 = math.exp %256 : vector<8x128xf32>
    %cst_49 = arith.constant 1.000000e+00 : f32
    %258 = vector.broadcast %cst_49 : f32 to vector<8x128xf32>
    %259 = arith.addf %258, %257 : vector<8x128xf32>
    %260 = arith.divf %258, %259 : vector<8x128xf32>
    %261 = vector.extract_strided_slice %254 {offsets = [0, 128], sizes = [8, 128], strides = [1, 1]} : vector<8x512xf32> to vector<8x128xf32>
    %262 = arith.negf %261 : vector<8x128xf32>
    %263 = math.exp %262 : vector<8x128xf32>
    %cst_50 = arith.constant 1.000000e+00 : f32
    %264 = vector.broadcast %cst_50 : f32 to vector<8x128xf32>
    %265 = arith.addf %264, %263 : vector<8x128xf32>
    %266 = arith.divf %264, %265 : vector<8x128xf32>
    %267 = vector.extract_strided_slice %254 {offsets = [0, 256], sizes = [8, 128], strides = [1, 1]} : vector<8x512xf32> to vector<8x128xf32>
    %268 = math.tanh %267 : vector<8x128xf32>
    %269 = vector.extract_strided_slice %254 {offsets = [0, 384], sizes = [8, 128], strides = [1, 1]} : vector<8x512xf32> to vector<8x128xf32>
    %270 = arith.negf %269 : vector<8x128xf32>
    %271 = math.exp %270 : vector<8x128xf32>
    %cst_51 = arith.constant 1.000000e+00 : f32
    %272 = vector.broadcast %cst_51 : f32 to vector<8x128xf32>
    %273 = arith.addf %272, %271 : vector<8x128xf32>
    %274 = arith.divf %272, %273 : vector<8x128xf32>
    %275 = arith.mulf %266, %242 : vector<8x128xf32>
    %276 = arith.mulf %260, %268 : vector<8x128xf32>
    %277 = arith.addf %275, %276 : vector<8x128xf32>
    %278 = math.tanh %277 : vector<8x128xf32>
    %279 = arith.mulf %274, %278 : vector<8x128xf32>
    %280 = vector.broadcast %c7_i32 : i32 to vector<8x1xi32>
    %281 = arith.cmpi eq, %2, %280 : vector<8x1xi32>
    %282 = vector.shape_cast %281 : vector<8x1xi1> to vector<8x1xi1>
    %283 = vector.broadcast %282 : vector<8x1xi1> to vector<8x128xi1>
    %284 = arith.select %283, %279, %249 : vector<8x128xi1>, vector<8x128xf32>
    %c8_i32 = arith.constant 8 : i32
    %c0_52 = arith.constant 0 : index
    %c0_53 = arith.constant 0 : index
    %285 = vector.load %arg3[%c0_52, %c0_53] : memref<128x128xf32, #tpu.memory_space<vmem>>, vector<128x128xf32>
    %cst_54 = arith.constant dense<0.000000e+00> : vector<8x128xf32>
    %286 = tpu.matmul %284, %285, %cst_54 {dimension_numbers = #tpu.dot_dimension_numbers<[1], [0], [0], [1], [0, 0, 1, 1], [], []>} : vector<8x128xf32>, vector<128x128xf32>, vector<8x128xf32> -> vector<8x128xf32>
    %c0_55 = arith.constant 0 : index
    %c0_56 = arith.constant 0 : index
    %287 = vector.load %arg4[%c0_55, %c0_56] : memref<1x128xf32, #tpu.memory_space<vmem>>, vector<1x128xf32>
    %288 = vector.broadcast %287 : vector<1x128xf32> to vector<8x128xf32>
    %289 = arith.addf %286, %288 : vector<8x128xf32>
    %c0_57 = arith.constant 0 : index
    %c0_58 = arith.constant 0 : index
    %290 = vector.load %arg5[%c0_57, %c0_58] : memref<8x128xf32, #tpu.memory_space<vmem>>, vector<8x128xf32>
    tpu.vector_store %arg5[%c0_57, %c0_58], %289 {strides = array<i32>} : memref<8x128xf32, #tpu.memory_space<vmem>>, vector<8x128xf32>,
    return
  }
}

</mosaic_0001>

<bundles_post_ra>
// kernel: tpu_custom_call.1
= control target key start
LH: loop header
LB: loop body
LE: loop exit
PB: predicated region body
PF: predicated region fallthrough
CT: control target
= control target key end

     0   :  { %10 = vsyncpa [#allocation3], 0  ;;  %s3056_s0 = inlined_call_operand.vmem [shape: s32[8,1], index: 0, kind: input, shape index: {}]   ;;  %s3057_s1 = inlined_call_operand.hbm [shape: f32[8,8,512], index: 1, kind: input, shape index: {}]   ;;  %s3058_s2 = inlined_call_operand.hbm [shape: f32[128,512], index: 2, kind: input, shape index: {}]   ;;  %s3059_s3 = inlined_call_operand.hbm [shape: f32[128,128], index: 3, kind: input, shape index: {}]   ;;  %s3060_s4 = inlined_call_operand.vmem [shape: f32[1,128], index: 4, kind: input, shape index: {}]   ;;  %s3061_s5 = inlined_call_operand.hbm [shape: f32[8,128], index: 5, kind: output, shape index: {}]  }
   0x1   :  { %11 = vsyncpa [#allocation6], 0 }
   0x2   :  { %12 = vsyncpa [#allocation4], 0  ;;  %s2543_s18 = smov [#allocation5]   ;;  %s2544_s20 = smov [#allocation2]  }
   0x3   :  { %s32_s19 = sshll.u32 %s2543_s18, 4  ;;  %s20_s21 = sshll.u32 %s2544_s20, 4  ;;  %s33_s19 = int_to_ptr.vmem [resolvable:$true] %s32_s19  ;;  %s2585_s21 = int_to_ptr.vmem [resolvable:$true] %s20_s21 }
   0x4   :  { %s2449_s24 = scalar_lea.hbm %s3058_s2, 8192 }
   0x5   :  { %p2450_p0 = scmp.ne.s32.totalorder %s3058_s2, %s2449_s24  ;;  %p2453_p1 = scmp.lt.u32.totalorder %s2449_s24, %s3058_s2 }
   0x7   :  { %p2455_p2 = pnand %p2453_p1, %p2450_p0 }
   0x9   :  { %2458 = shalt.err (!%p2455_p2)
}
   0xa   :  { %s2459_s29 = scalar_lea.vmem %s33_s19, 8192  ;;  %p2464_p4 = scmp.lt.s32.totalorder %s33_s19, %s33_s19 }
   0xb   :  { %p2460_p3 = scmp.ne.s32.totalorder %s33_s19, %s2459_s29  ;;  %p2465_p5 = scmp.lt.s32.totalorder %s2459_s29, %s2459_s29 }
   0xd   :  { %p2466_p6 = por %p2465_p5, %p2464_p4 }
   0xf   :  { %p2467_p7 = pnand %p2466_p6, %p2460_p3 }
  0x11   :  { %2470 = shalt.err (!%p2467_p7)
}
  0x12   :  { %s2545_s30 = smov 512   ;;  %s2546_s6 = smov 32  }
  0x13   :  { %38 = dma.hbm_to_vmem [thread:$0]  %s3058_s2, 8192, %s33_s19, [#allocation6], %s2545_s30, %s2545_s30, %s2546_s6  }
  0x14   :  { %s2471_s11 = scalar_lea.hbm %s3057_s1, 4096 }
  0x15   :  { %p2472_p8 = scmp.ne.s32.totalorder %s3057_s1, %s2471_s11  ;;  %p2475_p9 = scmp.lt.u32.totalorder %s2471_s11, %s3057_s1 }
  0x17   :  { %p2477_p10 = pnand %p2475_p9, %p2472_p8 }
  0x19   :  { %2480 = shalt.err (!%p2477_p10)
}
  0x1a   :  { %s2481_s16 = scalar_lea.vmem %s2585_s21, 4096  ;;  %p2486_p12 = scmp.lt.s32.totalorder %s2585_s21, %s2585_s21 }
  0x1b   :  { %p2482_p11 = scmp.ne.s32.totalorder %s2585_s21, %s2481_s16  ;;  %p2487_p13 = scmp.lt.s32.totalorder %s2481_s16, %s2481_s16 }
  0x1d   :  { %p2488_p0 = por %p2487_p13, %p2486_p12 }
  0x1f   :  { %p2489_p1 = pnand %p2488_p0, %p2482_p11 }
  0x21   :  { %2492 = shalt.err (!%p2489_p1)
}
  0x22   :  { %26 = dma.hbm_to_vmem [thread:$0]  %s3057_s1, 4096, %s2585_s21, [#allocation3], %s2545_s30, %s2545_s30, %s2546_s6  }
  0x23   :  { %s2547_s18 = smov [#allocation7]   ;;  %s2493_s23 = scalar_lea.hbm %s3059_s3, 2048 }
  0x24   :  { %s44_s19 = sshll.u32 %s2547_s18, 4  ;;  %p2494_p2 = scmp.ne.s32.totalorder %s3059_s3, %s2493_s23  ;;  %s45_s19 = int_to_ptr.vmem [resolvable:$true] %s44_s19 }
  0x25   :  { %p2497_p3 = scmp.lt.u32.totalorder %s2493_s23, %s3059_s3 }
  0x27   :  { %p2499_p4 = pnand %p2497_p3, %p2494_p2 }
  0x29   :  { %2502 = shalt.err (!%p2499_p4)
}
  0x2a   :  { %s2503_s28 = scalar_lea.vmem %s45_s19, 2048  ;;  %p2508_p6 = scmp.lt.s32.totalorder %s45_s19, %s45_s19 }
  0x2b   :  { %p2504_p5 = scmp.ne.s32.totalorder %s45_s19, %s2503_s28  ;;  %p2509_p7 = scmp.lt.s32.totalorder %s2503_s28, %s2503_s28 }
  0x2d   :  { %p2510_p8 = por %p2509_p7, %p2508_p6 }
  0x2f   :  { %p2511_p9 = pnand %p2510_p8, %p2504_p5 }
  0x31   :  { %2514 = shalt.err (!%p2511_p9)
}
  0x32   :  { %s2548_s1 = smov 128   ;;  %s2549_s21 = smov 8  }
  0x33   :  { %50 = dma.hbm_to_vmem [thread:$0]  %s3059_s3, 2048, %s45_s19, [#allocation6], %s2548_s1, %s2548_s1, %s2549_s21  }
  0x34   :  { %2537 = dma.done.wait [#allocation3], 4096  }
  0x35   :  { %2538 = vsyncadd [#allocation3], 4294963200 }
  0x36   :  { %2539 = dma.done.wait [#allocation6], 10240  }
  0x37   :  { %2540 = vsyncadd [#allocation6], 4294957056  ;;  %v2550_v0 = vmov 0.0   ;;  %v2551_v1 = vmov 0   ;;  %v65_v2 = vld [vmem:[#allocation5 + $0x8] sm:$0xff]  ;;  %v64_v4 = vld [vmem:[#allocation5] sm:$0xff] }
  0x38   :  { %196 = vmatprep.mubr.f32.mxu0 %v2550_v0  ;;  %267 = vmatprep.mubr.f32.mxu1 %v2550_v0  ;;  %v69_v3 = vld [vmem:[#allocation5 + $0x28] sm:$0xff]  ;;  %v68_v6 = vld [vmem:[#allocation5 + $0x20] sm:$0xff]  ;;  %v67_v20 = vld [vmem:[#allocation5 + $0x18] sm:$0xff]  ;;  %vm2553_vm15 = vmmov 0   ;;  %s2554_s8 = smov [#allocation8]  }
  0x39   :  { %2319 = vset.pattern.permute.xlu0 %v2551_v1  ;;  %2320 = vset.pattern.permute.xlu1 %v2551_v1  ;;  %v2632_v5 = vpack.c.bf16 %v69_v3, %v65_v2  ;;  %v73_v7 = vld [vmem:[#allocation5 + $0x48] sm:$0xff]  ;;  %v2634_v9 = vpack.c.bf16 %v68_v6, %v64_v4  ;;  %v72_v11 = vld [vmem:[#allocation5 + $0x40] sm:$0xff]  ;;  %v71_v21 = vld [vmem:[#allocation5 + $0x38] sm:$0xff]  ;;  %s1683_s9 = sshll.u32 %s2554_s8, 4  ;;  %s1684_s9 = int_to_ptr.vmem [resolvable:$true] %s1683_s9 }
  0x3a   :  { %v77_v8 = vld [vmem:[#allocation5 + $0x68] sm:$0xff]  ;;  %v76_v12 = vld [vmem:[#allocation5 + $0x60] sm:$0xff]  ;;  %v2645_v23 = vpack.c.bf16 %v71_v21, %v67_v20  ;;  %v66_v24 = vld [vmem:[#allocation5 + $0x10] sm:$0xff]  ;;  %s2515_s10 = scalar_lea.vmem %s1684_s9, 128  ;;  %p2520_p11 = scmp.lt.s32.totalorder %s1684_s9, %s1684_s9 }
  0x3b   :  { %v2636_v10 = vpack.c.bf16 %v77_v8, %v73_v7  ;;  %v81_v13 = vld [vmem:[#allocation5 + $0x88] sm:$0xff]  ;;  %1772 = vmatprep.subr.bf16.mxu0 %v2632_v5  ;;  %v2640_v15 = vpack.c.bf16 %v76_v12, %v72_v11  ;;  %v80_v16 = vld [vmem:[#allocation5 + $0x80] sm:$0xff]  ;;  %v70_v25 = vld [vmem:[#allocation5 + $0x30] sm:$0xff]  ;;  %p2516_p10 = scmp.ne.s32.totalorder %s1684_s9, %s2515_s10  ;;  %p2521_p12 = scmp.lt.s32.totalorder %s2515_s10, %s2515_s10 }
  0x3c   :  { %v85_v14 = vld [vmem:[#allocation5 + $0xa8] sm:$0xff]  ;;  %1774 = vmatpush1.bf16.msra.mxu0 %v2634_v9  ;;  %v84_v17 = vld [vmem:[#allocation5 + $0xa0] sm:$0xff]  ;;  %v2647_v26 = vpack.c.bf16 %v70_v25, %v66_v24  ;;  %1804 = vmatprep.subr.bf16.mxu1 %v2645_v23  ;;  %v75_v28 = vld [vmem:[#allocation5 + $0x58] sm:$0xff] }
  0x3d   :  { %1776 = vmatprep.subr.bf16.mxu0 %v2636_v10  ;;  %v2643_v18 = vpack.c.bf16 %v85_v14, %v81_v13  ;;  %v89_v19 = vld [vmem:[#allocation5 + $0xc8] sm:$0xff]  ;;  %v2650_v27 = vpack.c.bf16 %v84_v17, %v80_v16  ;;  %v79_v29 = vld [vmem:[#allocation5 + $0x78] sm:$0xff]  ;;  %v74_v30 = vld [vmem:[#allocation5 + $0x50] sm:$0xff]  ;;  %p2522_p13 = por %p2521_p12, %p2520_p11 }
  0x3e   :  { %v93_v22 = vld [vmem:[#allocation5 + $0xe8] sm:$0xff]  ;;  %v88_v32 = vld [vmem:[#allocation5 + $0xc0] sm:$0xff]  ;;  %1806 = vmatpush1.bf16.msra.mxu1 %v2647_v26  ;;  %v2657_v34 = vpack.c.bf16 %v79_v29, %v75_v28  ;;  %v78_v35 = vld [vmem:[#allocation5 + $0x70] sm:$0xff] }
  0x3f   :  { %v2654_v31 = vpack.c.bf16 %v93_v22, %v89_v19  ;;  %v92_v33 = vld [vmem:[#allocation5 + $0xe0] sm:$0xff]  ;;  %v97_v36 = vld [vmem:[#allocation5 + $0x108] sm:$0xff]  ;;  %v2659_v38 = vpack.c.bf16 %v78_v35, %v74_v30  ;;  %v83_v39 = vld [vmem:[#allocation5 + $0x98] sm:$0xff]  ;;  %p2523_p0 = pnand %p2522_p13, %p2516_p10 }
  0x40   :  { %1778 = vmatpush1.bf16.msra.mxu0 %v2640_v15  ;;  %v101_v37 = vld [vmem:[#allocation5 + $0x128] sm:$0xff]  ;;  %1808 = vmatprep.subr.bf16.mxu1 %v2657_v34  ;;  %v87_v40 = vld [vmem:[#allocation5 + $0xb8] sm:$0xff]  ;;  %v82_v41 = vld [vmem:[#allocation5 + $0x90] sm:$0xff]  ;;  %v2663_v43 = vpack.c.bf16 %v92_v33, %v88_v32 }
  0x41   :  { %1780 = vmatprep.subr.bf16.mxu0 %v2643_v18  ;;  %v86_v42 = vld [vmem:[#allocation5 + $0xb0] sm:$0xff]  ;;  %v96_v44 = vld [vmem:[#allocation5 + $0x100] sm:$0xff]  ;;  %v2665_v46 = vpack.c.bf16 %v87_v40, %v83_v39  ;;  %v2668_v47 = vpack.c.bf16 %v101_v37, %v97_v36  ;;  %v105_v48 = vld [vmem:[#allocation5 + $0x148] sm:$0xff] }
  0x42   :  { %v100_v45 = vld [vmem:[#allocation5 + $0x120] sm:$0xff]  ;;  %1810 = vmatpush1.bf16.msra.mxu1 %v2659_v38  ;;  %v2671_v49 = vpack.c.bf16 %v86_v42, %v82_v41  ;;  %v91_v50 = vld [vmem:[#allocation5 + $0xd8] sm:$0xff]  ;;  %v109_v52 = vld [vmem:[#allocation5 + $0x168] sm:$0xff] }
  0x43   :  { %v95_v51 = vld [vmem:[#allocation5 + $0xf8] sm:$0xff]  ;;  %1812 = vmatprep.subr.bf16.mxu1 %v2665_v46  ;;  %v90_v54 = vld [vmem:[#allocation5 + $0xd0] sm:$0xff]  ;;  %v2677_v56 = vpack.c.bf16 %v100_v45, %v96_v44  ;;  %v2680_v59 = vpack.c.bf16 %v109_v52, %v105_v48  ;;  %v104_v60 = vld [vmem:[#allocation5 + $0x140] sm:$0xff] }
  0x44   :  { %1782 = vmatpush1.bf16.msra.mxu0 %v2650_v27  ;;  %v2674_v53 = vpack.c.bf16 %v95_v51, %v91_v50  ;;  %v94_v55 = vld [vmem:[#allocation5 + $0xf0] sm:$0xff]  ;;  %v99_v57 = vld [vmem:[#allocation5 + $0x118] sm:$0xff]  ;;  %v108_v61 = vld [vmem:[#allocation5 + $0x160] sm:$0xff] }
  0x45   :  { %1784 = vmatprep.subr.bf16.mxu0 %v2654_v31  ;;  %v103_v58 = vld [vmem:[#allocation5 + $0x138] sm:$0xff]  ;;  %v113_v62 = vld [vmem:[#allocation5 + $0x188] sm:$0xff]  ;;  %v2683_v63 = vpack.c.bf16 %v94_v55, %v90_v54  ;;  %v98_v4 = vld [vmem:[#allocation5 + $0x110] sm:$0xff]  ;;  %v2689_v11 = vpack.c.bf16 %v108_v61, %v104_v60 }
  0x46   :  { %1814 = vmatpush1.bf16.msra.mxu1 %v2671_v49  ;;  %v117_v2 = vld [vmem:[#allocation5 + $0x1a8] sm:$0xff]  ;;  %v2686_v3 = vpack.c.bf16 %v103_v58, %v99_v57  ;;  %v102_v6 = vld [vmem:[#allocation5 + $0x130] sm:$0xff]  ;;  %v107_v7 = vld [vmem:[#allocation5 + $0x158] sm:$0xff] }
  0x47   :  { %1816 = vmatprep.subr.bf16.mxu1 %v2674_v53  ;;  %v111_v8 = vld [vmem:[#allocation5 + $0x178] sm:$0xff]  ;;  %v112_v12 = vld [vmem:[#allocation5 + $0x180] sm:$0xff]  ;;  %v2692_v13 = vpack.c.bf16 %v117_v2, %v113_v62  ;;  %v121_v16 = vld [vmem:[#allocation5 + $0x1c8] sm:$0xff]  ;;  %v2695_v17 = vpack.c.bf16 %v102_v6, %v98_v4 }
  0x48   :  { %1786 = vmatpush1.bf16.msra.mxu0 %v2663_v43  ;;  %v116_v14 = vld [vmem:[#allocation5 + $0x1a0] sm:$0xff]  ;;  %v125_v20 = vld [vmem:[#allocation5 + $0x1e8] sm:$0xff]  ;;  %v2701_v21 = vpack.c.bf16 %v111_v8, %v107_v7  ;;  %v106_v22 = vld [vmem:[#allocation5 + $0x150] sm:$0xff] }
  0x49   :  { %1788 = vmatprep.subr.bf16.mxu0 %v2668_v47  ;;  %v62_v19 = vld [vmem:[%s3056_s0] sm:$0xff]  ;;  %v110_v24 = vld [vmem:[#allocation5 + $0x170] sm:$0xff]  ;;  %v115_v28 = vld [vmem:[#allocation5 + $0x198] sm:$0xff]  ;;  %v2706_v30 = vpack.c.bf16 %v116_v14, %v112_v12  ;;  %v2710_v32 = vpack.c.bf16 %v125_v20, %v121_v16 }
  0x4a   :  { %1818 = vmatpush1.bf16.msra.mxu1 %v2683_v63  ;;  %v2703_v25 = vadd.s32 4294967295, %v62_v19  ;;  %v119_v29 = vld [vmem:[#allocation5 + $0x1b8] sm:$0xff]  ;;  %v120_v33 = vld [vmem:[#allocation5 + $0x1c0] sm:$0xff]  ;;  %v2713_v36 = vpack.c.bf16 %v110_v24, %v106_v22  ;;  %v114_v40 = vld [vmem:[#allocation5 + $0x190] sm:$0xff] }
  0x4b   :  { %1820 = vmatprep.subr.bf16.mxu1 %v2686_v3  ;;  %v124_v35 = vld [vmem:[#allocation5 + $0x1e0] sm:$0xff]  ;;  %v2717_v39 = vpack.c.bf16 %v119_v29, %v115_v28  ;;  %v118_v41 = vld [vmem:[#allocation5 + $0x1b0] sm:$0xff]  ;;  %v123_v42 = vld [vmem:[#allocation5 + $0x1d8] sm:$0xff] }
  0x4c   :  { %1790 = vmatpush1.bf16.msra.mxu0 %v2677_v56  ;;  %vm302_vm0 = vcmp.eq.s32.totalorder %v2703_v25, 0  ;;  %v127_v44 = vld [vmem:[#allocation5 + $0x1f8] sm:$0xff]  ;;  %v2720_v45 = vpack.c.bf16 %v124_v35, %v120_v33  ;;  %v2724_v48 = vpack.c.bf16 %v118_v41, %v114_v40  ;;  %v122_v51 = vld [vmem:[#allocation5 + $0x1d0] sm:$0xff]  ;;  %vm484_vm1 = vcmp.eq.s32.totalorder %v2703_v25, 1  ;;  %v128_v57 = vld [vmem:[#allocation2] sm:$0xff] }
  0x4d   :  { %1792 = vmatprep.subr.bf16.mxu0 %v2680_v59  ;;  %v303_v37 = vsel %vm302_vm0, 1, %v2551_v1  ;;  %v2727_v50 = vpack.c.bf16 %v127_v44, %v123_v42  ;;  %v126_v52 = vld [vmem:[#allocation5 + $0x1f0] sm:$0xff]  ;;  %v485_v55 = vsel %vm484_vm1, 1, %v2551_v1  ;;  %v129_v58 = vld [vmem:[#allocation2 + $0x8] sm:$0xff]  ;;  %v131_v7 = vld [vmem:[#allocation2 + $0x18] sm:$0xff]  ;;  %vm666_vm2 = vcmp.eq.s32.totalorder %v2703_v25, 2 }
  0x4e   :  { %1822 = vmatpush1.bf16.msra.mxu1 %v2695_v17  ;;  %305 = vperm.xlu0 %2319, %v303_v37   ;;  %v2731_v54 = vpack.c.bf16 %v126_v52, %v122_v51  ;;  %v130_v16 = vld [vmem:[#allocation2 + $0x10] sm:$0xff]  ;;  %vm848_vm5 = vcmp.eq.s32.totalorder %v2703_v25, 3  ;;  %vm1030_vm7 = vcmp.eq.s32.totalorder %v2703_v25, 4  ;;  %vm1212_vm9 = vcmp.eq.s32.totalorder %v2703_v25, 5 }
  0x4f   :  { %1824 = vmatprep.subr.bf16.mxu1 %v2701_v21  ;;  %vm1394_vm11 = vcmp.eq.s32.totalorder %v2703_v25, 6  ;;  %vm1576_vm13 = vcmp.eq.s32.totalorder %v2703_v25, 7 }
  0x50   :  { %1794 = vmatpush1.bf16.msra.mxu0 %v2689_v11 }
  0x51   :  { %1796 = vmatprep.subr.bf16.mxu0 %v2692_v13 }
  0x52   :  { %1826 = vmatpush1.bf16.msra.mxu1 %v2713_v36  ;;  %487 = vperm.xlu0 %2319, %v485_v55  }
  0x53   :  { %1828 = vmatprep.subr.bf16.mxu1 %v2717_v39 }
  0x54   :  { %1798 = vmatpush1.bf16.msra.mxu0 %v2706_v30 }
  0x55   :  { %1800 = vmatprep.subr.bf16.mxu0 %v2710_v32 }
  0x56   :  { %1830 = vmatpush1.bf16.msra.mxu1 %v2724_v48 }
  0x57   :  { %1832 = vmatprep.subr.bf16.mxu1 %v2727_v50 }
  0x58   :  { %1802 = vmatpush1.bf16.msra.mxu0 %v2720_v45 }
  0x59   :  { %1836 = vmatprep.subr.bf16.mxu0 %v2632_v5 }
  0x5a   :  { %1834 = vmatpush1.bf16.msra.mxu1 %v2731_v54 }
  0x5b   :  { %197 = vmatmul.mubr.f32.vlgmr.msra.gmra.mrb[0].mxu0 %v2550_v0  ;;  %1868 = vmatprep.subr.bf16.mxu1 %v2645_v23 }
  0x5c   :  { %1838 = vmatpush1.bf16.msra.mxu0 %v2634_v9  ;;  %378 = vmatprep.mubr.f32.mxu0 %v2550_v0 }
  0x5d   :  { %1840 = vmatprep.subr.bf16.mxu0 %v2636_v10  ;;  %268 = vmatmul.mubr.f32.vlgmr.msra.gmra.mrb[0].mxu1 %v2550_v0 }
  0x5e   :  { %1870 = vmatpush1.bf16.msra.mxu1 %v2647_v26  ;;  %449 = vmatprep.mubr.f32.mxu1 %v2550_v0 }
  0x5f   :  { %1872 = vmatprep.subr.bf16.mxu1 %v2657_v34 }
  0x60   :  { %1842 = vmatpush1.bf16.msra.mxu0 %v2640_v15 }
  0x61   :  { %1844 = vmatprep.subr.bf16.mxu0 %v2643_v18 }
  0x62   :  { %1874 = vmatpush1.bf16.msra.mxu1 %v2659_v38 }
  0x63   :  { %1876 = vmatprep.subr.bf16.mxu1 %v2665_v46 }
  0x64   :  { %1846 = vmatpush1.bf16.msra.mxu0 %v2650_v27 }
  0x65   :  { %1848 = vmatprep.subr.bf16.mxu0 %v2654_v31 }
  0x66   :  { %1878 = vmatpush1.bf16.msra.mxu1 %v2671_v49 }
  0x67   :  { %1880 = vmatprep.subr.bf16.mxu1 %v2674_v53 }
  0x68   :  { %1850 = vmatpush1.bf16.msra.mxu0 %v2663_v43 }
  0x69   :  { %1852 = vmatprep.subr.bf16.mxu0 %v2668_v47 }
  0x6a   :  { %1882 = vmatpush1.bf16.msra.mxu1 %v2683_v63 }
  0x6b   :  { %1884 = vmatprep.subr.bf16.mxu1 %v2686_v3 }
  0x6c   :  { %1854 = vmatpush1.bf16.msra.mxu0 %v2677_v56 }
  0x6d   :  { %1856 = vmatprep.subr.bf16.mxu0 %v2680_v59 }
  0x6e   :  { %1886 = vmatpush1.bf16.msra.mxu1 %v2695_v17 }
  0x6f   :  { %1888 = vmatprep.subr.bf16.mxu1 %v2701_v21 }
  0x70   :  { %1858 = vmatpush1.bf16.msra.mxu0 %v2689_v11 }
  0x71   :  { %1860 = vmatprep.subr.bf16.mxu0 %v2692_v13 }
  0x72   :  { %1890 = vmatpush1.bf16.msra.mxu1 %v2713_v36 }
  0x73   :  { %1892 = vmatprep.subr.bf16.mxu1 %v2717_v39 }
  0x74   :  { %1862 = vmatpush1.bf16.msra.mxu0 %v2706_v30 }
  0x75   :  { %1864 = vmatprep.subr.bf16.mxu0 %v2710_v32 }
  0x76   :  { %1894 = vmatpush1.bf16.msra.mxu1 %v2724_v48 }
  0x77   :  { %1896 = vmatprep.subr.bf16.mxu1 %v2727_v50 }
  0x78   :  { %1866 = vmatpush1.bf16.msra.mxu0 %v2720_v45 }
  0x79   :  { %1900 = vmatprep.subr.bf16.mxu0 %v2632_v5 }
  0x7a   :  { %1898 = vmatpush1.bf16.msra.mxu1 %v2731_v54 }
  0x7b   :  { %1932 = vmatprep.subr.bf16.mxu1 %v2645_v23 }
 0x12e   :  { %v198_v60 = vpop.f32.mrb[0].mxu0 }
 0x12f   :  { %v274_v61 = vadd.f32 %v198_v60, %v128_v57  ;;  %v200_v62 = vpop.f32.mrb[1].mxu0  ;;  %v310_v60 = vld [vmem:[#allocation2 + $0x20] sm:$0xff] }
 0x130   :  { %v275_v2 = vadd.f32 %v200_v62, %v129_v58  ;;  %v269_v8 = vpop.f32.mrb[0].mxu1  ;;  %v667_v58 = vsel %vm666_vm2, 1, %v2551_v1 }
 0x131   :  { %v1694_v4 = vmul.f32 -1.442695, %v274_v61  ;;  %v271_v12 = vpop.f32.mrb[1].mxu1  ;;  %v276_v20 = vadd.f32 %v269_v8, %v130_v16  ;;  %669 = vperm.xlu1 %2320, %v667_v58   ;;  %v311_v61 = vld [vmem:[#allocation2 + $0x28] sm:$0xff]  ;;  %v313_v16 = vld [vmem:[#allocation2 + $0x38] sm:$0xff] }
 0x132   :  { %v1695_v6 = vmul.f32 -1.442695, %v275_v2  ;;  %v277_v14 = vadd.f32 %v271_v12, %v131_v7 }
 0x133   :  { %2321 = vpow2.f32 %v1694_v4 }
 0x134   :  { %2323 = vpow2.f32 %v1695_v6  ;;  %v1696_v19 = vmul.f32 -1.442695, %v277_v14 }
 0x136   :  { %2325 = vpow2.f32 %v1696_v19 }
 0x137   :  { %2327 = vtanh.f32 %v276_v20  ;;  %v312_v20 = vld [vmem:[#allocation2 + $0x30] sm:$0xff] }
 0x13d   :  { %v2322_v22 = vpop.eup %2321 }
 0x13e   :  { %v2324_v24 = vpop.eup %2323  ;;  %v281_v28 = vadd.f32 1.0, %v2322_v22 }
 0x13f   :  { %v287_v29 = vadd.f32 1.0, %v2324_v24 }
 0x140   :  { %2329 = vrcp.f32 %v281_v28  ;;  %v2326_v33 = vpop.eup %2325 }
 0x141   :  { %2331 = vrcp.f32 %v287_v29  ;;  %v2328_v35 = vpop.eup %2327  ;;  %v294_v40 = vadd.f32 1.0, %v2326_v33 }
 0x143   :  { %2333 = vrcp.f32 %v294_v40 }
 0x14a   :  { %v2330_v37 = vpop.eup %2329 }
 0x14b   :  { %v2332_v41 = vpop.eup %2331  ;;  %v298_v42 = vmul.f32 %v2330_v37, %v2328_v35 }
 0x14c   :  { %v297_v44 = vmul.f32 0.0, %v2332_v41 }
 0x14d   :  { %v2334_v52 = vpop.eup %2333 }
 0x14e   :  { %v2775_v51 = vadd.f32 %v298_v42, %v297_v44 }
 0x150   :  { %2335 = vtanh.f32 %v2775_v51 }
 0x15a   :  { %v2336_v55 = vpop.eup %2335 }
 0x15b   :  { %v2778_v57 = vmul.f32 %v2336_v55, %v2334_v52 }
 0x15d   :  { %379 = vmatmul.mubr.f32.vlgmr.msra.gmra.mrb[2].mxu0 %v2778_v57  ;;  %450 = vmatmul.mubr.f32.vlgmr.msra.gmra.mrb[2].mxu1 %v2778_v57 }
 0x15e   :  { %1902 = vmatpush1.bf16.msra.mxu0 %v2634_v9  ;;  %1934 = vmatpush1.bf16.msra.mxu1 %v2647_v26 }
 0x15f   :  { %1904 = vmatprep.subr.bf16.mxu0 %v2636_v10  ;;  %1936 = vmatprep.subr.bf16.mxu1 %v2657_v34 }
 0x160   :  { %560 = vmatprep.mubr.f32.mxu0 %v2550_v0  ;;  %631 = vmatprep.mubr.f32.mxu1 %v2550_v0 }
 0x162   :  { %1906 = vmatpush1.bf16.msra.mxu0 %v2640_v15  ;;  %1938 = vmatpush1.bf16.msra.mxu1 %v2659_v38 }
 0x163   :  { %1908 = vmatprep.subr.bf16.mxu0 %v2643_v18  ;;  %1940 = vmatprep.subr.bf16.mxu1 %v2665_v46 }
 0x166   :  { %1910 = vmatpush1.bf16.msra.mxu0 %v2650_v27  ;;  %1942 = vmatpush1.bf16.msra.mxu1 %v2671_v49 }
 0x167   :  { %1912 = vmatprep.subr.bf16.mxu0 %v2654_v31  ;;  %1944 = vmatprep.subr.bf16.mxu1 %v2674_v53 }
 0x16a   :  { %1914 = vmatpush1.bf16.msra.mxu0 %v2663_v43  ;;  %1946 = vmatpush1.bf16.msra.mxu1 %v2683_v63 }
 0x16b   :  { %1916 = vmatprep.subr.bf16.mxu0 %v2668_v47  ;;  %1948 = vmatprep.subr.bf16.mxu1 %v2686_v3 }
 0x16e   :  { %1918 = vmatpush1.bf16.msra.mxu0 %v2677_v56  ;;  %1950 = vmatpush1.bf16.msra.mxu1 %v2695_v17 }
 0x16f   :  { %1920 = vmatprep.subr.bf16.mxu0 %v2680_v59  ;;  %1952 = vmatprep.subr.bf16.mxu1 %v2701_v21 }
 0x172   :  { %1922 = vmatpush1.bf16.msra.mxu0 %v2689_v11  ;;  %1954 = vmatpush1.bf16.msra.mxu1 %v2713_v36 }
 0x173   :  { %1924 = vmatprep.subr.bf16.mxu0 %v2692_v13  ;;  %1956 = vmatprep.subr.bf16.mxu1 %v2717_v39 }
 0x176   :  { %1926 = vmatpush1.bf16.msra.mxu0 %v2706_v30  ;;  %1958 = vmatpush1.bf16.msra.mxu1 %v2724_v48 }
 0x177   :  { %1928 = vmatprep.subr.bf16.mxu0 %v2710_v32  ;;  %1960 = vmatprep.subr.bf16.mxu1 %v2727_v50 }
 0x17a   :  { %1930 = vmatpush1.bf16.msra.mxu0 %v2720_v45  ;;  %1962 = vmatpush1.bf16.msra.mxu1 %v2731_v54 }
 0x17b   :  { %1964 = vmatprep.subr.bf16.mxu0 %v2632_v5  ;;  %1996 = vmatprep.subr.bf16.mxu1 %v2645_v23 }
 0x230   :  { %v380_v62 = vpop.f32.mrb[2].mxu0  ;;  %v451_v2 = vpop.f32.mrb[2].mxu1 }
 0x231   :  { %v456_v4 = vadd.f32 %v380_v62, %v310_v60  ;;  %v382_v6 = vpop.f32.mrb[3].mxu0  ;;  %v453_v7 = vpop.f32.mrb[3].mxu1  ;;  %v458_v24 = vadd.f32 %v451_v2, %v312_v20 }
 0x232   :  { %v457_v8 = vadd.f32 %v382_v6, %v311_v61  ;;  %v459_v19 = vadd.f32 %v453_v7, %v313_v16  ;;  %v306_v60 = vpop.permute.xlu0 %305 }
 0x233   :  { %v1697_v12 = vmul.f32 -1.442695, %v456_v4  ;;  %vm307_vm3 = vcmp.eq.s32.totalorder %v306_v60, 1 }
 0x234   :  { %v1698_v14 = vmul.f32 -1.442695, %v457_v8  ;;  %v1699_v22 = vmul.f32 -1.442695, %v459_v19  ;;  %v308_v6 = vsel %vm307_vm3, %v2778_v57, 0.0  ;;  %v492_v57 = vld [vmem:[#allocation2 + $0x40] sm:$0xff] }
 0x235   :  { %2337 = vpow2.f32 %v1697_v12  ;;  %v493_v8 = vld [vmem:[#allocation2 + $0x48] sm:$0xff] }
 0x236   :  { %2339 = vpow2.f32 %v1698_v14  ;;  %v488_v61 = vpop.permute.xlu0 %487 }
 0x237   :  { %2341 = vpow2.f32 %v1699_v22  ;;  %vm489_vm4 = vcmp.eq.s32.totalorder %v488_v61, 1 }
 0x238   :  { %2343 = vtanh.f32 %v458_v24 }
 0x23f   :  { %v2338_v28 = vpop.eup %2337 }
 0x240   :  { %v2340_v29 = vpop.eup %2339  ;;  %v463_v33 = vadd.f32 1.0, %v2338_v28 }
 0x241   :  { %v469_v35 = vadd.f32 1.0, %v2340_v29  ;;  %v2342_v37 = vpop.eup %2341  ;;  %v495_v29 = vld [vmem:[#allocation2 + $0x58] sm:$0xff] }
 0x242   :  { %2345 = vrcp.f32 %v463_v33  ;;  %v2344_v40 = vpop.eup %2343  ;;  %v476_v52 = vadd.f32 1.0, %v2342_v37 }
 0x243   :  { %2347 = vrcp.f32 %v469_v35  ;;  %v494_v35 = vld [vmem:[#allocation2 + $0x50] sm:$0xff] }
 0x244   :  { %2349 = vrcp.f32 %v476_v52 }
 0x24c   :  { %v2346_v41 = vpop.eup %2345 }
 0x24d   :  { %v2348_v42 = vpop.eup %2347  ;;  %v480_v44 = vmul.f32 %v2346_v41, %v2344_v40 }
 0x24e   :  { %v479_v55 = vmul.f32 %v2348_v42, %v2775_v51  ;;  %v2350_v62 = vpop.eup %2349  ;;  %v849_v51 = vsel %vm848_vm5, 1, %v2551_v1 }
 0x24f   :  { %851 = vperm.xlu1 %2320, %v849_v51  }
 0x250   :  { %v2819_v58 = vadd.f32 %v480_v44, %v479_v55 }
 0x252   :  { %2351 = vtanh.f32 %v2819_v58 }
 0x25c   :  { %v2352_v2 = vpop.eup %2351 }
 0x25d   :  { %v483_v4 = vmul.f32 %v2352_v2, %v2350_v62 }
 0x25f   :  { %v2823_v7 = vsel %vm489_vm4, %v483_v4, %v308_v6  ;;  %561 = vmatmul.mubr.f32.vlgmr.msra.gmra.mrb[4].mxu0 %v483_v4  ;;  %632 = vmatmul.mubr.f32.vlgmr.msra.gmra.mrb[4].mxu1 %v483_v4 }
 0x260   :  { %1966 = vmatpush1.bf16.msra.mxu0 %v2634_v9  ;;  %1998 = vmatpush1.bf16.msra.mxu1 %v2647_v26 }
 0x261   :  { %1968 = vmatprep.subr.bf16.mxu0 %v2636_v10  ;;  %2000 = vmatprep.subr.bf16.mxu1 %v2657_v34 }
 0x262   :  { %742 = vmatprep.mubr.f32.mxu0 %v2550_v0  ;;  %813 = vmatprep.mubr.f32.mxu1 %v2550_v0 }
 0x264   :  { %1970 = vmatpush1.bf16.msra.mxu0 %v2640_v15  ;;  %2002 = vmatpush1.bf16.msra.mxu1 %v2659_v38 }
 0x265   :  { %1972 = vmatprep.subr.bf16.mxu0 %v2643_v18  ;;  %2004 = vmatprep.subr.bf16.mxu1 %v2665_v46 }
 0x268   :  { %1974 = vmatpush1.bf16.msra.mxu0 %v2650_v27  ;;  %2006 = vmatpush1.bf16.msra.mxu1 %v2671_v49 }
 0x269   :  { %1976 = vmatprep.subr.bf16.mxu0 %v2654_v31  ;;  %2008 = vmatprep.subr.bf16.mxu1 %v2674_v53 }
 0x26c   :  { %1978 = vmatpush1.bf16.msra.mxu0 %v2663_v43  ;;  %2010 = vmatpush1.bf16.msra.mxu1 %v2683_v63 }
 0x26d   :  { %1980 = vmatprep.subr.bf16.mxu0 %v2668_v47  ;;  %2012 = vmatprep.subr.bf16.mxu1 %v2686_v3 }
 0x270   :  { %1982 = vmatpush1.bf16.msra.mxu0 %v2677_v56  ;;  %2014 = vmatpush1.bf16.msra.mxu1 %v2695_v17 }
 0x271   :  { %1984 = vmatprep.subr.bf16.mxu0 %v2680_v59  ;;  %2016 = vmatprep.subr.bf16.mxu1 %v2701_v21 }
 0x274   :  { %1986 = vmatpush1.bf16.msra.mxu0 %v2689_v11  ;;  %2018 = vmatpush1.bf16.msra.mxu1 %v2713_v36 }
 0x275   :  { %1988 = vmatprep.subr.bf16.mxu0 %v2692_v13  ;;  %2020 = vmatprep.subr.bf16.mxu1 %v2717_v39 }
 0x278   :  { %1990 = vmatpush1.bf16.msra.mxu0 %v2706_v30  ;;  %2022 = vmatpush1.bf16.msra.mxu1 %v2724_v48 }
 0x279   :  { %1992 = vmatprep.subr.bf16.mxu0 %v2710_v32  ;;  %2024 = vmatprep.subr.bf16.mxu1 %v2727_v50 }
 0x27c   :  { %1994 = vmatpush1.bf16.msra.mxu0 %v2720_v45  ;;  %2026 = vmatpush1.bf16.msra.mxu1 %v2731_v54 }
 0x27d   :  { %2028 = vmatprep.subr.bf16.mxu0 %v2632_v5  ;;  %2060 = vmatprep.subr.bf16.mxu1 %v2645_v23 }
 0x332   :  { %v562_v12 = vpop.f32.mrb[4].mxu0  ;;  %v633_v14 = vpop.f32.mrb[4].mxu1 }
 0x333   :  { %v638_v16 = vadd.f32 %v562_v12, %v492_v57  ;;  %v564_v19 = vpop.f32.mrb[5].mxu0  ;;  %v635_v20 = vpop.f32.mrb[5].mxu1  ;;  %v640_v40 = vadd.f32 %v633_v14, %v494_v35 }
 0x334   :  { %v639_v22 = vadd.f32 %v564_v19, %v493_v8  ;;  %v641_v33 = vadd.f32 %v635_v20, %v495_v29  ;;  %v670_v57 = vpop.permute.xlu1 %669  ;;  %v675_v19 = vld [vmem:[#allocation2 + $0x68] sm:$0xff] }
 0x335   :  { %v1700_v24 = vmul.f32 -1.442695, %v638_v16  ;;  %vm671_vm6 = vcmp.eq.s32.totalorder %v670_v57, 1 }
 0x336   :  { %v1701_v28 = vmul.f32 -1.442695, %v639_v22  ;;  %v1702_v37 = vmul.f32 -1.442695, %v641_v33 }
 0x337   :  { %2353 = vpow2.f32 %v1700_v24 }
 0x338   :  { %2355 = vpow2.f32 %v1701_v28 }
 0x339   :  { %2357 = vpow2.f32 %v1702_v37 }
 0x33a   :  { %2359 = vtanh.f32 %v640_v40  ;;  %v677_v40 = vld [vmem:[#allocation2 + $0x78] sm:$0xff] }
 0x341   :  { %v2354_v41 = vpop.eup %2353 }
 0x342   :  { %v2356_v42 = vpop.eup %2355  ;;  %v645_v44 = vadd.f32 1.0, %v2354_v41 }
 0x343   :  { %v651_v52 = vadd.f32 1.0, %v2356_v42  ;;  %v2358_v55 = vpop.eup %2357  ;;  %v676_v42 = vld [vmem:[#allocation2 + $0x70] sm:$0xff] }
 0x344   :  { %2361 = vrcp.f32 %v645_v44  ;;  %v2360_v60 = vpop.eup %2359  ;;  %v658_v4 = vadd.f32 1.0, %v2358_v55 }
 0x345   :  { %2363 = vrcp.f32 %v651_v52 }
 0x346   :  { %2365 = vrcp.f32 %v658_v4 }
 0x34e   :  { %v2362_v61 = vpop.eup %2361 }
 0x34f   :  { %v2364_v62 = vpop.eup %2363  ;;  %v662_v2 = vmul.f32 %v2362_v61, %v2360_v60 }
 0x350   :  { %v661_v6 = vmul.f32 %v2364_v62, %v2819_v58  ;;  %v2366_v8 = vpop.eup %2365  ;;  %v1031_v58 = vsel %vm1030_vm7, 1, %v2551_v1 }
 0x351   :  { %1033 = vperm.xlu0 %2319, %v1031_v58  }
 0x352   :  { %v2862_v51 = vadd.f32 %v662_v2, %v661_v6 }
 0x354   :  { %2367 = vtanh.f32 %v2862_v51 }
 0x35e   :  { %v2368_v12 = vpop.eup %2367 }
 0x35f   :  { %v665_v14 = vmul.f32 %v2368_v12, %v2366_v8 }
 0x361   :  { %v2866_v16 = vsel %vm671_vm6, %v665_v14, %v2823_v7  ;;  %743 = vmatmul.mubr.f32.vlgmr.msra.gmra.mrb[6].mxu0 %v665_v14  ;;  %814 = vmatmul.mubr.f32.vlgmr.msra.gmra.mrb[6].mxu1 %v665_v14  ;;  %v674_v7 = vld [vmem:[#allocation2 + $0x60] sm:$0xff] }
 0x362   :  { %2030 = vmatpush1.bf16.msra.mxu0 %v2634_v9  ;;  %2062 = vmatpush1.bf16.msra.mxu1 %v2647_v26 }
 0x363   :  { %2032 = vmatprep.subr.bf16.mxu0 %v2636_v10  ;;  %2064 = vmatprep.subr.bf16.mxu1 %v2657_v34 }
 0x364   :  { %924 = vmatprep.mubr.f32.mxu0 %v2550_v0  ;;  %995 = vmatprep.mubr.f32.mxu1 %v2550_v0 }
 0x366   :  { %2034 = vmatpush1.bf16.msra.mxu0 %v2640_v15  ;;  %2066 = vmatpush1.bf16.msra.mxu1 %v2659_v38 }
 0x367   :  { %2036 = vmatprep.subr.bf16.mxu0 %v2643_v18  ;;  %2068 = vmatprep.subr.bf16.mxu1 %v2665_v46 }
 0x36a   :  { %2038 = vmatpush1.bf16.msra.mxu0 %v2650_v27  ;;  %2070 = vmatpush1.bf16.msra.mxu1 %v2671_v49 }
 0x36b   :  { %2040 = vmatprep.subr.bf16.mxu0 %v2654_v31  ;;  %2072 = vmatprep.subr.bf16.mxu1 %v2674_v53 }
 0x36e   :  { %2042 = vmatpush1.bf16.msra.mxu0 %v2663_v43  ;;  %2074 = vmatpush1.bf16.msra.mxu1 %v2683_v63 }
 0x36f   :  { %2044 = vmatprep.subr.bf16.mxu0 %v2668_v47  ;;  %2076 = vmatprep.subr.bf16.mxu1 %v2686_v3 }
 0x372   :  { %2046 = vmatpush1.bf16.msra.mxu0 %v2677_v56  ;;  %2078 = vmatpush1.bf16.msra.mxu1 %v2695_v17 }
 0x373   :  { %2048 = vmatprep.subr.bf16.mxu0 %v2680_v59  ;;  %2080 = vmatprep.subr.bf16.mxu1 %v2701_v21 }
 0x376   :  { %2050 = vmatpush1.bf16.msra.mxu0 %v2689_v11  ;;  %2082 = vmatpush1.bf16.msra.mxu1 %v2713_v36 }
 0x377   :  { %2052 = vmatprep.subr.bf16.mxu0 %v2692_v13  ;;  %2084 = vmatprep.subr.bf16.mxu1 %v2717_v39 }
 0x37a   :  { %2054 = vmatpush1.bf16.msra.mxu0 %v2706_v30  ;;  %2086 = vmatpush1.bf16.msra.mxu1 %v2724_v48 }
 0x37b   :  { %2056 = vmatprep.subr.bf16.mxu0 %v2710_v32  ;;  %2088 = vmatprep.subr.bf16.mxu1 %v2727_v50 }
 0x37e   :  { %2058 = vmatpush1.bf16.msra.mxu0 %v2720_v45  ;;  %2090 = vmatpush1.bf16.msra.mxu1 %v2731_v54 }
 0x37f   :  { %2092 = vmatprep.subr.bf16.mxu0 %v2632_v5  ;;  %2124 = vmatprep.subr.bf16.mxu1 %v2645_v23 }
 0x434   :  { %v744_v20 = vpop.f32.mrb[6].mxu0  ;;  %v815_v22 = vpop.f32.mrb[6].mxu1 }
 0x435   :  { %v820_v24 = vadd.f32 %v744_v20, %v674_v7  ;;  %v746_v28 = vpop.f32.mrb[7].mxu0  ;;  %v817_v29 = vpop.f32.mrb[7].mxu1  ;;  %v822_v52 = vadd.f32 %v815_v22, %v676_v42 }
 0x436   :  { %v821_v33 = vadd.f32 %v746_v28, %v675_v19  ;;  %v823_v41 = vadd.f32 %v817_v29, %v677_v40  ;;  %v852_v7 = vpop.permute.xlu1 %851  ;;  %v857_v28 = vld [vmem:[#allocation2 + $0x88] sm:$0xff] }
 0x437   :  { %v1703_v35 = vmul.f32 -1.442695, %v820_v24  ;;  %vm853_vm8 = vcmp.eq.s32.totalorder %v852_v7, 1 }
 0x438   :  { %v1704_v37 = vmul.f32 -1.442695, %v821_v33  ;;  %v1705_v44 = vmul.f32 -1.442695, %v823_v41 }
 0x439   :  { %2369 = vpow2.f32 %v1703_v35 }
 0x43a   :  { %2371 = vpow2.f32 %v1704_v37 }
 0x43b   :  { %2373 = vpow2.f32 %v1705_v44 }
 0x43c   :  { %2375 = vtanh.f32 %v822_v52  ;;  %v859_v52 = vld [vmem:[#allocation2 + $0x98] sm:$0xff] }
 0x443   :  { %v2370_v55 = vpop.eup %2369 }
 0x444   :  { %v2372_v60 = vpop.eup %2371  ;;  %v827_v61 = vadd.f32 1.0, %v2370_v55 }
 0x445   :  { %v833_v62 = vadd.f32 1.0, %v2372_v60  ;;  %v2374_v2 = vpop.eup %2373  ;;  %v858_v60 = vld [vmem:[#allocation2 + $0x90] sm:$0xff] }
 0x446   :  { %2377 = vrcp.f32 %v827_v61  ;;  %v2376_v4 = vpop.eup %2375  ;;  %v840_v12 = vadd.f32 1.0, %v2374_v2 }
 0x447   :  { %2379 = vrcp.f32 %v833_v62 }
 0x448   :  { %2381 = vrcp.f32 %v840_v12 }
 0x450   :  { %v2378_v6 = vpop.eup %2377 }
 0x451   :  { %v2380_v57 = vpop.eup %2379  ;;  %v844_v8 = vmul.f32 %v2378_v6, %v2376_v4 }
 0x452   :  { %v843_v14 = vmul.f32 %v2380_v57, %v2862_v51  ;;  %v2382_v19 = vpop.eup %2381  ;;  %v1213_v51 = vsel %vm1212_vm9, 1, %v2551_v1 }
 0x453   :  { %1215 = vperm.xlu1 %2320, %v1213_v51  }
 0x454   :  { %v2905_v58 = vadd.f32 %v844_v8, %v843_v14 }
 0x456   :  { %2383 = vtanh.f32 %v2905_v58 }
 0x460   :  { %v2384_v20 = vpop.eup %2383 }
 0x461   :  { %v847_v22 = vmul.f32 %v2384_v20, %v2382_v19 }
 0x463   :  { %v2909_v24 = vsel %vm853_vm8, %v847_v22, %v2866_v16  ;;  %925 = vmatmul.mubr.f32.vlgmr.msra.gmra.mrb[8].mxu0 %v847_v22  ;;  %996 = vmatmul.mubr.f32.vlgmr.msra.gmra.mrb[8].mxu1 %v847_v22  ;;  %v856_v16 = vld [vmem:[#allocation2 + $0x80] sm:$0xff] }
 0x464   :  { %2094 = vmatpush1.bf16.msra.mxu0 %v2634_v9  ;;  %2126 = vmatpush1.bf16.msra.mxu1 %v2647_v26 }
 0x465   :  { %2096 = vmatprep.subr.bf16.mxu0 %v2636_v10  ;;  %2128 = vmatprep.subr.bf16.mxu1 %v2657_v34 }
 0x466   :  { %1106 = vmatprep.mubr.f32.mxu0 %v2550_v0  ;;  %1177 = vmatprep.mubr.f32.mxu1 %v2550_v0 }
 0x468   :  { %2098 = vmatpush1.bf16.msra.mxu0 %v2640_v15  ;;  %2130 = vmatpush1.bf16.msra.mxu1 %v2659_v38 }
 0x469   :  { %2100 = vmatprep.subr.bf16.mxu0 %v2643_v18  ;;  %2132 = vmatprep.subr.bf16.mxu1 %v2665_v46 }
 0x46c   :  { %2102 = vmatpush1.bf16.msra.mxu0 %v2650_v27  ;;  %2134 = vmatpush1.bf16.msra.mxu1 %v2671_v49 }
 0x46d   :  { %2104 = vmatprep.subr.bf16.mxu0 %v2654_v31  ;;  %2136 = vmatprep.subr.bf16.mxu1 %v2674_v53 }
 0x470   :  { %2106 = vmatpush1.bf16.msra.mxu0 %v2663_v43  ;;  %2138 = vmatpush1.bf16.msra.mxu1 %v2683_v63 }
 0x471   :  { %2108 = vmatprep.subr.bf16.mxu0 %v2668_v47  ;;  %2140 = vmatprep.subr.bf16.mxu1 %v2686_v3 }
 0x474   :  { %2110 = vmatpush1.bf16.msra.mxu0 %v2677_v56  ;;  %2142 = vmatpush1.bf16.msra.mxu1 %v2695_v17 }
 0x475   :  { %2112 = vmatprep.subr.bf16.mxu0 %v2680_v59  ;;  %2144 = vmatprep.subr.bf16.mxu1 %v2701_v21 }
 0x478   :  { %2114 = vmatpush1.bf16.msra.mxu0 %v2689_v11  ;;  %2146 = vmatpush1.bf16.msra.mxu1 %v2713_v36 }
 0x479   :  { %2116 = vmatprep.subr.bf16.mxu0 %v2692_v13  ;;  %2148 = vmatprep.subr.bf16.mxu1 %v2717_v39 }
 0x47c   :  { %2118 = vmatpush1.bf16.msra.mxu0 %v2706_v30  ;;  %2150 = vmatpush1.bf16.msra.mxu1 %v2724_v48 }
 0x47d   :  { %2120 = vmatprep.subr.bf16.mxu0 %v2710_v32  ;;  %2152 = vmatprep.subr.bf16.mxu1 %v2727_v50 }
 0x480   :  { %2122 = vmatpush1.bf16.msra.mxu0 %v2720_v45  ;;  %2154 = vmatpush1.bf16.msra.mxu1 %v2731_v54 }
 0x481   :  { %2156 = vmatprep.subr.bf16.mxu0 %v2632_v5  ;;  %2188 = vmatprep.subr.bf16.mxu1 %v2645_v23 }
 0x536   :  { %v926_v29 = vpop.f32.mrb[8].mxu0  ;;  %v997_v33 = vpop.f32.mrb[8].mxu1 }
 0x537   :  { %v1002_v35 = vadd.f32 %v926_v29, %v856_v16  ;;  %v928_v37 = vpop.f32.mrb[9].mxu0  ;;  %v999_v40 = vpop.f32.mrb[9].mxu1  ;;  %v1004_v62 = vadd.f32 %v997_v33, %v858_v60 }
 0x538   :  { %v1003_v41 = vadd.f32 %v928_v37, %v857_v28  ;;  %v1005_v55 = vadd.f32 %v999_v40, %v859_v52  ;;  %v1034_v16 = vpop.permute.xlu0 %1033  ;;  %v1039_v37 = vld [vmem:[#allocation2 + $0xa8] sm:$0xff] }
 0x539   :  { %v1706_v42 = vmul.f32 -1.442695, %v1002_v35  ;;  %vm1035_vm10 = vcmp.eq.s32.totalorder %v1034_v16, 1 }
 0x53a   :  { %v1707_v44 = vmul.f32 -1.442695, %v1003_v41  ;;  %v1708_v61 = vmul.f32 -1.442695, %v1005_v55 }
 0x53b   :  { %2385 = vpow2.f32 %v1706_v42 }
 0x53c   :  { %2387 = vpow2.f32 %v1707_v44 }
 0x53d   :  { %2389 = vpow2.f32 %v1708_v61 }
 0x53e   :  { %2391 = vtanh.f32 %v1004_v62  ;;  %v1041_v62 = vld [vmem:[#allocation2 + $0xb8] sm:$0xff] }
 0x545   :  { %v2386_v2 = vpop.eup %2385 }
 0x546   :  { %v2388_v4 = vpop.eup %2387  ;;  %v1009_v6 = vadd.f32 1.0, %v2386_v2 }
 0x547   :  { %v1015_v57 = vadd.f32 1.0, %v2388_v4  ;;  %v2390_v8 = vpop.eup %2389 }
 0x548   :  { %2393 = vrcp.f32 %v1009_v6  ;;  %v2392_v12 = vpop.eup %2391  ;;  %v1022_v20 = vadd.f32 1.0, %v2390_v8 }
 0x549   :  { %2395 = vrcp.f32 %v1015_v57 }
 0x54a   :  { %2397 = vrcp.f32 %v1022_v20 }
 0x552   :  { %v2394_v14 = vpop.eup %2393 }
 0x553   :  { %v2396_v7 = vpop.eup %2395  ;;  %v1026_v19 = vmul.f32 %v2394_v14, %v2392_v12 }
 0x554   :  { %v1025_v22 = vmul.f32 %v2396_v7, %v2905_v58  ;;  %v2398_v28 = vpop.eup %2397  ;;  %v1395_v58 = vsel %vm1394_vm11, 1, %v2551_v1 }
 0x555   :  { %1397 = vperm.xlu0 %2319, %v1395_v58  }
 0x556   :  { %v2948_v51 = vadd.f32 %v1026_v19, %v1025_v22 }
 0x558   :  { %2399 = vtanh.f32 %v2948_v51 }
 0x562   :  { %v2400_v29 = vpop.eup %2399 }
 0x563   :  { %v1029_v33 = vmul.f32 %v2400_v29, %v2398_v28 }
 0x565   :  { %v2952_v35 = vsel %vm1035_vm10, %v1029_v33, %v2909_v24  ;;  %1107 = vmatmul.mubr.f32.vlgmr.msra.gmra.mrb[10].mxu0 %v1029_v33  ;;  %1178 = vmatmul.mubr.f32.vlgmr.msra.gmra.mrb[10].mxu1 %v1029_v33  ;;  %v1038_v24 = vld [vmem:[#allocation2 + $0xa0] sm:$0xff]  ;;  %v1216_v33 = vpop.permute.xlu1 %1215 }
 0x566   :  { %2158 = vmatpush1.bf16.msra.mxu0 %v2634_v9  ;;  %2190 = vmatpush1.bf16.msra.mxu1 %v2647_v26  ;;  %vm1217_vm12 = vcmp.eq.s32.totalorder %v1216_v33, 1  ;;  %v1402_v33 = vld [vmem:[#allocation2 + $0xe0] sm:$0xff] }
 0x567   :  { %2160 = vmatprep.subr.bf16.mxu0 %v2636_v10  ;;  %2192 = vmatprep.subr.bf16.mxu1 %v2657_v34 }
 0x568   :  { %1288 = vmatprep.mubr.f32.mxu0 %v2550_v0  ;;  %1359 = vmatprep.mubr.f32.mxu1 %v2550_v0 }
 0x56a   :  { %2162 = vmatpush1.bf16.msra.mxu0 %v2640_v15  ;;  %2194 = vmatpush1.bf16.msra.mxu1 %v2659_v38 }
 0x56b   :  { %2164 = vmatprep.subr.bf16.mxu0 %v2643_v18  ;;  %2196 = vmatprep.subr.bf16.mxu1 %v2665_v46 }
 0x56e   :  { %2166 = vmatpush1.bf16.msra.mxu0 %v2650_v27  ;;  %2198 = vmatpush1.bf16.msra.mxu1 %v2671_v49 }
 0x56f   :  { %2168 = vmatprep.subr.bf16.mxu0 %v2654_v31  ;;  %2200 = vmatprep.subr.bf16.mxu1 %v2674_v53 }
 0x572   :  { %2170 = vmatpush1.bf16.msra.mxu0 %v2663_v43  ;;  %2202 = vmatpush1.bf16.msra.mxu1 %v2683_v63 }
 0x573   :  { %2172 = vmatprep.subr.bf16.mxu0 %v2668_v47  ;;  %2204 = vmatprep.subr.bf16.mxu1 %v2686_v3 }
 0x576   :  { %2174 = vmatpush1.bf16.msra.mxu0 %v2677_v56  ;;  %2206 = vmatpush1.bf16.msra.mxu1 %v2695_v17 }
 0x577   :  { %2176 = vmatprep.subr.bf16.mxu0 %v2680_v59  ;;  %2208 = vmatprep.subr.bf16.mxu1 %v2701_v21 }
 0x57a   :  { %2178 = vmatpush1.bf16.msra.mxu0 %v2689_v11  ;;  %2210 = vmatpush1.bf16.msra.mxu1 %v2713_v36 }
 0x57b   :  { %2180 = vmatprep.subr.bf16.mxu0 %v2692_v13  ;;  %2212 = vmatprep.subr.bf16.mxu1 %v2717_v39 }
 0x57e   :  { %2182 = vmatpush1.bf16.msra.mxu0 %v2706_v30  ;;  %2214 = vmatpush1.bf16.msra.mxu1 %v2724_v48 }
 0x57f   :  { %2184 = vmatprep.subr.bf16.mxu0 %v2710_v32  ;;  %2216 = vmatprep.subr.bf16.mxu1 %v2727_v50 }
 0x582   :  { %2186 = vmatpush1.bf16.msra.mxu0 %v2720_v45  ;;  %2218 = vmatpush1.bf16.msra.mxu1 %v2731_v54 }
 0x583   :  { %2220 = vmatprep.subr.bf16.mxu0 %v2632_v5  ;;  %2252 = vmatprep.subr.bf16.mxu1 %v2645_v23  ;;  %v1040_v23 = vld [vmem:[#allocation2 + $0xb0] sm:$0xff] }
 0x638   :  { %v1108_v40 = vpop.f32.mrb[10].mxu0  ;;  %v1179_v41 = vpop.f32.mrb[10].mxu1 }
 0x639   :  { %v1184_v42 = vadd.f32 %v1108_v40, %v1038_v24  ;;  %v1110_v44 = vpop.f32.mrb[11].mxu0  ;;  %v1181_v52 = vpop.f32.mrb[11].mxu1  ;;  %v1186_v4 = vadd.f32 %v1179_v41, %v1040_v23  ;;  %v1584_v41 = vld [vmem:[#allocation7 + $0x8] sm:$0xff]  ;;  %v1589_v23 = vld [vmem:[#allocation7 + $0x30] sm:$0xff] }
 0x63a   :  { %v1185_v55 = vadd.f32 %v1110_v44, %v1039_v37  ;;  %v1187_v5 = vadd.f32 %v1181_v52, %v1041_v62  ;;  %v2552_v44 = vmov 0.0|0.0   ;;  %v1585_v52 = vld [vmem:[#allocation7 + $0x10] sm:$0xff]  ;;  %v1588_v62 = vld [vmem:[#allocation7 + $0x28] sm:$0xff] }
 0x63b   :  { %v1709_v60 = vmul.f32 -1.442695, %v1184_v42 }
 0x63c   :  { %v1710_v61 = vmul.f32 -1.442695, %v1185_v55  ;;  %v1711_v2 = vmul.f32 -1.442695, %v1187_v5  ;;  %v1586_v55 = vld [vmem:[#allocation7 + $0x18] sm:$0xff] }
 0x63d   :  { %2401 = vpow2.f32 %v1709_v60  ;;  %v2287_v60 = vpack.c.bf16 %v1586_v55, %v1585_v52 }
 0x63e   :  { %2403 = vpow2.f32 %v1710_v61  ;;  %v1587_v61 = vld [vmem:[#allocation7 + $0x20] sm:$0xff] }
 0x63f   :  { %2405 = vpow2.f32 %v1711_v2  ;;  %v2290_v5 = vpack.c.bf16 %v1588_v62, %v1587_v61  ;;  %v1590_v2 = vld [vmem:[#allocation7 + $0x38] sm:$0xff] }
 0x640   :  { %2407 = vtanh.f32 %v1186_v4  ;;  %v2293_v4 = vpack.c.bf16 %v1590_v2, %v1589_v23 }
 0x647   :  { %v2402_v6 = vpop.eup %2401 }
 0x648   :  { %v2404_v57 = vpop.eup %2403  ;;  %v1191_v8 = vadd.f32 1.0, %v2402_v6  ;;  %v1591_v6 = vld [vmem:[#allocation7 + $0x40] sm:$0xff] }
 0x649   :  { %v1197_v12 = vadd.f32 1.0, %v2404_v57  ;;  %v2406_v14 = vpop.eup %2405  ;;  %v1592_v57 = vld [vmem:[#allocation7 + $0x48] sm:$0xff] }
 0x64a   :  { %2409 = vrcp.f32 %v1191_v8  ;;  %v2408_v7 = vpop.eup %2407  ;;  %v1204_v16 = vadd.f32 1.0, %v2406_v14  ;;  %v2296_v8 = vpack.c.bf16 %v1592_v57, %v1591_v6  ;;  %v1594_v14 = vld [vmem:[#allocation7 + $0x58] sm:$0xff] }
 0x64b   :  { %2411 = vrcp.f32 %v1197_v12  ;;  %v1593_v12 = vld [vmem:[#allocation7 + $0x50] sm:$0xff] }
 0x64c   :  { %2413 = vrcp.f32 %v1204_v16  ;;  %v1597_v16 = vld [vmem:[#allocation7 + $0x70] sm:$0xff] }
 0x654   :  { %v2410_v19 = vpop.eup %2409 }
 0x655   :  { %v2412_v20 = vpop.eup %2411  ;;  %v1208_v22 = vmul.f32 %v2410_v19, %v2408_v7  ;;  %v2299_v7 = vpack.c.bf16 %v1594_v14, %v1593_v12  ;;  %v1595_v19 = vld [vmem:[#allocation7 + $0x60] sm:$0xff] }
 0x656   :  { %v1207_v28 = vmul.f32 %v2412_v20, %v2948_v51  ;;  %v2414_v58 = vpop.eup %2413  ;;  %v1596_v20 = vld [vmem:[#allocation7 + $0x68] sm:$0xff] }
 0x658   :  { %v2991_v29 = vadd.f32 %v1208_v22, %v1207_v28  ;;  %v2302_v22 = vpack.c.bf16 %v1596_v20, %v1595_v19  ;;  %v1598_v28 = vld [vmem:[#allocation7 + $0x78] sm:$0xff] }
 0x65a   :  { %2415 = vtanh.f32 %v2991_v29 }
 0x664   :  { %v2416_v24 = vpop.eup %2415 }
 0x665   :  { %v1211_v37 = vmul.f32 %v2416_v24, %v2414_v58  ;;  %v1403_v58 = vld [vmem:[#allocation2 + $0xe8] sm:$0xff] }
 0x667   :  { %v2995_v40 = vsel %vm1217_vm12, %v1211_v37, %v2952_v35  ;;  %1289 = vmatmul.mubr.f32.vlgmr.msra.gmra.mrb[12].mxu0 %v1211_v37  ;;  %1360 = vmatmul.mubr.f32.vlgmr.msra.gmra.mrb[12].mxu1 %v1211_v37  ;;  %v1583_v35 = vld [vmem:[#allocation7] sm:$0xff] }
 0x668   :  { %2222 = vmatpush1.bf16.msra.mxu0 %v2634_v9  ;;  %2254 = vmatpush1.bf16.msra.mxu1 %v2647_v26  ;;  %v1577_v9 = vsel %vm1576_vm13, 1, %v2551_v1  ;;  %v2284_v42 = vpack.c.bf16 %v1584_v41, %v1583_v35 }
 0x669   :  { %2224 = vmatprep.subr.bf16.mxu0 %v2636_v10  ;;  %2256 = vmatprep.subr.bf16.mxu1 %v2657_v34  ;;  %v1220_v10 = vld [vmem:[#allocation2 + $0xc0] sm:$0xff] }
 0x66a   :  { %1470 = vmatprep.mubr.f32.mxu0 %v2550_v0  ;;  %1541 = vmatprep.mubr.f32.mxu1 %v2550_v0 }
 0x66b   :  { %1579 = vperm.xlu1 %2320, %v1577_v9  }
 0x66c   :  { %2226 = vmatpush1.bf16.msra.mxu0 %v2640_v15  ;;  %2258 = vmatpush1.bf16.msra.mxu1 %v2659_v38  ;;  %v1221_v15 = vld [vmem:[#allocation2 + $0xc8] sm:$0xff] }
 0x66d   :  { %2228 = vmatprep.subr.bf16.mxu0 %v2643_v18  ;;  %2260 = vmatprep.subr.bf16.mxu1 %v2665_v46 }
 0x670   :  { %2230 = vmatpush1.bf16.msra.mxu0 %v2650_v27  ;;  %2262 = vmatpush1.bf16.msra.mxu1 %v2671_v49 }
 0x671   :  { %2232 = vmatprep.subr.bf16.mxu0 %v2654_v31  ;;  %2264 = vmatprep.subr.bf16.mxu1 %v2674_v53  ;;  %v1222_v53 = vld [vmem:[#allocation2 + $0xd0] sm:$0xff] }
 0x674   :  { %2234 = vmatpush1.bf16.msra.mxu0 %v2663_v43  ;;  %2266 = vmatpush1.bf16.msra.mxu1 %v2683_v63 }
 0x675   :  { %2236 = vmatprep.subr.bf16.mxu0 %v2668_v47  ;;  %2268 = vmatprep.subr.bf16.mxu1 %v2686_v3  ;;  %v1223_v47 = vld [vmem:[#allocation2 + $0xd8] sm:$0xff] }
 0x678   :  { %2238 = vmatpush1.bf16.msra.mxu0 %v2677_v56  ;;  %2270 = vmatpush1.bf16.msra.mxu1 %v2695_v17 }
 0x679   :  { %2240 = vmatprep.subr.bf16.mxu0 %v2680_v59  ;;  %2272 = vmatprep.subr.bf16.mxu1 %v2701_v21 }
 0x67c   :  { %2242 = vmatpush1.bf16.msra.mxu0 %v2689_v11  ;;  %2274 = vmatpush1.bf16.msra.mxu1 %v2713_v36 }
 0x67d   :  { %2244 = vmatprep.subr.bf16.mxu0 %v2692_v13  ;;  %2276 = vmatprep.subr.bf16.mxu1 %v2717_v39 }
 0x680   :  { %2246 = vmatpush1.bf16.msra.mxu0 %v2706_v30  ;;  %2278 = vmatpush1.bf16.msra.mxu1 %v2724_v48 }
 0x681   :  { %2248 = vmatprep.subr.bf16.mxu0 %v2710_v32  ;;  %2280 = vmatprep.subr.bf16.mxu1 %v2727_v50 }
 0x684   :  { %2250 = vmatpush1.bf16.msra.mxu0 %v2720_v45  ;;  %2282 = vmatpush1.bf16.msra.mxu1 %v2731_v54  ;;  %v1398_v45 = vpop.permute.xlu0 %1397 }
 0x685   :  { %vm1399_vm14 = vcmp.eq.s32.totalorder %v1398_v45, 1  ;;  %2283 = vmatprep.subr.bf16.mxu0 %v2552_v44 }
 0x73a   :  { %v1290_v18 = vpop.f32.mrb[12].mxu0  ;;  %v1361_v26 = vpop.f32.mrb[12].mxu1 }
 0x73b   :  { %v1366_v27 = vadd.f32 %v1290_v18, %v1220_v10  ;;  %v1292_v31 = vpop.f32.mrb[13].mxu0  ;;  %v1363_v34 = vpop.f32.mrb[13].mxu1  ;;  %v1368_v59 = vadd.f32 %v1361_v26, %v1222_v53 }
 0x73c   :  { %v1367_v38 = vadd.f32 %v1292_v31, %v1221_v15  ;;  %v1369_v49 = vadd.f32 %v1363_v34, %v1223_v47  ;;  %v1404_v34 = vld [vmem:[#allocation2 + $0xf0] sm:$0xff] }
 0x73d   :  { %v1712_v43 = vmul.f32 -1.442695, %v1366_v27  ;;  %v1405_v27 = vld [vmem:[#allocation2 + $0xf8] sm:$0xff] }
 0x73e   :  { %v1713_v46 = vmul.f32 -1.442695, %v1367_v38  ;;  %v1714_v56 = vmul.f32 -1.442695, %v1369_v49 }
 0x73f   :  { %2417 = vpow2.f32 %v1712_v43 }
 0x740   :  { %2419 = vpow2.f32 %v1713_v46 }
 0x741   :  { %2421 = vpow2.f32 %v1714_v56 }
 0x742   :  { %2423 = vtanh.f32 %v1368_v59 }
 0x749   :  { %v2418_v63 = vpop.eup %2417 }
 0x74a   :  { %v2420_v1 = vpop.eup %2419  ;;  %v1373_v3 = vadd.f32 1.0, %v2418_v63 }
 0x74b   :  { %v1379_v11 = vadd.f32 1.0, %v2420_v1  ;;  %v2422_v13 = vpop.eup %2421 }
 0x74c   :  { %2425 = vrcp.f32 %v1373_v3  ;;  %v2424_v17 = vpop.eup %2423  ;;  %v1386_v32 = vadd.f32 1.0, %v2422_v13 }
 0x74d   :  { %2427 = vrcp.f32 %v1379_v11 }
 0x74e   :  { %2429 = vrcp.f32 %v1386_v32 }
 0x756   :  { %v2426_v21 = vpop.eup %2425 }
 0x757   :  { %v2428_v25 = vpop.eup %2427  ;;  %v1390_v30 = vmul.f32 %v2426_v21, %v2424_v17  ;;  %v1580_v21 = vpop.permute.xlu1 %1579 }
 0x758   :  { %v1389_v36 = vmul.f32 %v2428_v25, %v2991_v29  ;;  %v2430_v48 = vpop.eup %2429  ;;  %v2305_v29 = vpack.c.bf16 %v1598_v28, %v1597_v16  ;;  %vm1581_vm0 = vcmp.eq.s32.totalorder %v1580_v21, 1 }
 0x75a   :  { %v3032_v39 = vadd.f32 %v1390_v30, %v1389_v36  ;;  %v1718_v36 = vld [vmem:[%s3060_s4] ss:$0 sm:$0xff] }
 0x75c   :  { %2431 = vtanh.f32 %v3032_v39 }
 0x766   :  { %v2432_v50 = vpop.eup %2431 }
 0x767   :  { %v1393_v54 = vmul.f32 %v2432_v50, %v2430_v48 }
 0x769   :  { %v3036_v51 = vsel %vm1399_vm14, %v1393_v54, %v2995_v40  ;;  %1471 = vmatmul.mubr.f32.vlgmr.msra.gmra.mrb[14].mxu0 %v1393_v54  ;;  %1542 = vmatmul.mubr.f32.vlgmr.msra.gmra.mrb[14].mxu1 %v1393_v54 }
 0x76a   :  { %2285 = vmatpush3.bf16.msra.mxu0 %v2284_v42  ;;  %1768 = vmatprep.mubr.msk.f32.mxu0 %vm2553_vm15, %v2550_v0 }
 0x76b   :  { %2286 = vmatprep.subr.bf16.mxu0 %v2552_v44 }
 0x76e   :  { %2288 = vmatpush3.bf16.msra.mxu0 %v2287_v60 }
 0x76f   :  { %2289 = vmatprep.subr.bf16.mxu0 %v2552_v44 }
 0x772   :  { %2291 = vmatpush3.bf16.msra.mxu0 %v2290_v5 }
 0x773   :  { %2292 = vmatprep.subr.bf16.mxu0 %v2552_v44 }
 0x776   :  { %2294 = vmatpush3.bf16.msra.mxu0 %v2293_v4 }
 0x777   :  { %2295 = vmatprep.subr.bf16.mxu0 %v2552_v44 }
 0x77a   :  { %2297 = vmatpush3.bf16.msra.mxu0 %v2296_v8 }
 0x77b   :  { %2298 = vmatprep.subr.bf16.mxu0 %v2552_v44 }
 0x77e   :  { %2300 = vmatpush3.bf16.msra.mxu0 %v2299_v7 }
 0x77f   :  { %2301 = vmatprep.subr.bf16.mxu0 %v2552_v44 }
 0x782   :  { %2303 = vmatpush3.bf16.msra.mxu0 %v2302_v22 }
 0x783   :  { %2304 = vmatprep.subr.bf16.mxu0 %v2552_v44 }
 0x786   :  { %2306 = vmatpush3.bf16.msra.mxu0 %v2305_v29 }
 0x83c   :  { %v1472_v24 = vpop.f32.mrb[14].mxu0  ;;  %v1543_v37 = vpop.f32.mrb[14].mxu1 }
 0x83d   :  { %v1548_v40 = vadd.f32 %v1472_v24, %v1402_v33  ;;  %v1474_v9 = vpop.f32.mrb[15].mxu0  ;;  %v1545_v10 = vpop.f32.mrb[15].mxu1  ;;  %v1550_v43 = vadd.f32 %v1543_v37, %v1404_v34 }
 0x83e   :  { %v1549_v15 = vadd.f32 %v1474_v9, %v1403_v58  ;;  %v1551_v31 = vadd.f32 %v1545_v10, %v1405_v27 }
 0x83f   :  { %v1715_v18 = vmul.f32 -1.442695, %v1548_v40 }
 0x840   :  { %v1716_v26 = vmul.f32 -1.442695, %v1549_v15  ;;  %v1717_v38 = vmul.f32 -1.442695, %v1551_v31 }
 0x841   :  { %2433 = vpow2.f32 %v1715_v18 }
 0x842   :  { %2435 = vpow2.f32 %v1716_v26 }
 0x843   :  { %2437 = vpow2.f32 %v1717_v38 }
 0x844   :  { %2439 = vtanh.f32 %v1550_v43 }
 0x84b   :  { %v2434_v46 = vpop.eup %2433 }
 0x84c   :  { %v2436_v47 = vpop.eup %2435  ;;  %v1555_v0 = vadd.f32 1.0, %v2434_v46 }
 0x84d   :  { %v1561_v49 = vadd.f32 1.0, %v2436_v47  ;;  %v2438_v53 = vpop.eup %2437 }
 0x84e   :  { %2441 = vrcp.f32 %v1555_v0  ;;  %v2440_v56 = vpop.eup %2439  ;;  %v1568_v3 = vadd.f32 1.0, %v2438_v53 }
 0x84f   :  { %2443 = vrcp.f32 %v1561_v49 }
 0x850   :  { %2445 = vrcp.f32 %v1568_v3 }
 0x858   :  { %v2442_v59 = vpop.eup %2441 }
 0x859   :  { %v2444_v63 = vpop.eup %2443  ;;  %v1572_v1 = vmul.f32 %v2442_v59, %v2440_v56 }
 0x85a   :  { %v1571_v11 = vmul.f32 %v2444_v63, %v3032_v39  ;;  %v2446_v17 = vpop.eup %2445 }
 0x85c   :  { %v1573_v13 = vadd.f32 %v1572_v1, %v1571_v11 }
 0x85e   :  { %2447 = vtanh.f32 %v1573_v13 }
 0x868   :  { %v2448_v25 = vpop.eup %2447 }
 0x869   :  { %v1575_v30 = vmul.f32 %v2448_v25, %v2446_v17 }
 0x86b   :  { %v1582_v32 = vsel %vm1581_vm0, %v1575_v30, %v3036_v51 }
 0x86c   :  { %1769 = vmatmul.mubr.f32.vlgmr.msra.gmra.mrb[16].mxu0 %v1582_v32 }
 0x93f   :  { %v1672_v45 = vpop.f32.mrb[16].mxu0 }
 0x940   :  { %v1673_v48 = vadd.f32 %v1718_v36, %v1672_v45  ;;  %v1770_v39 = vpop.f32.mrb[17].mxu0 }
 0x942   :  { %1676 = vst [vmem:[#allocation8] sm:$0xff] %v1673_v48 }
 0x943   :  { %2526 = shalt.err (!%p2523_p0)
}
 0x944   :  { %s2527_s13 = scalar_lea.hbm %s3061_s5, 128 }
 0x945   :  { %p2528_p1 = scmp.ne.s32.totalorder %s3061_s5, %s2527_s13  ;;  %p2531_p2 = scmp.lt.u32.totalorder %s2527_s13, %s3061_s5 }
 0x947   :  { %p2533_p3 = pnand %p2531_p2, %p2528_p1 }
 0x949   :  { %2536 = shalt.err (!%p2533_p3)
}
 0x94a   :  { %1686 = dma.vmem_to_hbm [thread:$0]  %s1684_s9, 128, %s3061_s5, [#allocation4]  }
 0x94b   :  { %2541 = dma.done.wait [#allocation4], 128  }
 0x94c   :  { %2542 = vsyncadd [#allocation4], 4294967168 }
 0x94d   :  { %1690 = vsyncpa [#allocation3], 1 }
 0x94e   :  { %1691 = vsyncpa [#allocation6], 1 }
 0x94f   :  { %1692 = vsyncpa [#allocation4], 1 }

</bundles_post_ra>
